<compile_context>
chip_gen: v7x
topology: tpu7x:2x2x1
jax: 0.10.0
libtpu: 0.0.40
codegen_flags: <defaults>
</compile_context>

<pallas_src>
import functools

import jax
import jax.numpy as jnp
from jax import lax
from jax.experimental import pallas as pl
from jax.experimental.pallas import tpu as pltpu

LANE = 128        # last dim padded to a lane multiple (dense, unmasked stores)
SUBLANE = 8       # second-to-last dim padded to a sublane multiple
MXU_DTYPE = jnp.bfloat16   # MXU input format; accumulation is always f32
ACT_DTYPE = jnp.bfloat16   # inter-layer activations (matmul inputs only)


def _round_up(x, m):
    return (x + m - 1) // m * m


def _pad_to(a, shape):
    """Zero-pad an array up to `shape` (trailing padding only)."""
    pads = [(0, t - s) for s, t in zip(a.shape, shape)]
    if not any(p for _, p in pads):
        return a
    return jnp.pad(a, pads)


@functools.lru_cache(maxsize=None)
def _vmem_limit_bytes():
    """Generation-aware VMEM ask: ~48 MiB on v7x, ~100 MiB on v5e/v6e."""
    cap = 64 * 1024 * 1024
    try:
        info = pltpu.get_tpu_info()
        cap = int(getattr(info, "vmem_capacity_bytes", cap))
    except Exception:
        pass
    # Leave headroom for Mosaic internal scratch / semaphores; cap the ask.
    return max(32 * 1024 * 1024, min(cap - 16 * 1024 * 1024, 100 * 1024 * 1024))


def _choose_time_chunk(seq, batch_p, in_pad, h_pad, x_bytes):
    """Budget-derived time chunk; prefer a chunk that divides `seq` exactly."""
    budget = int(_vmem_limit_bytes() * 0.75)
    per_t = batch_p * (2 * in_pad * x_bytes      # x chunk, double-buffered
                       + 2 * h_pad * 2           # bf16 out chunk, double-buffered
                       + h_pad * 4)              # f32 pre-activation scratch
    fixed = (in_pad * h_pad * 2 + h_pad * h_pad * 2   # W_ih, W_hh (single buffer)
             + h_pad * 4                              # bias
             + 3 * batch_p * h_pad * 4)               # h scratch + final-hidden out
    tc_max = max(1, (budget - fixed) // max(1, per_t))
    tc_max = int(min(tc_max, 512, seq))
    best = 1
    for d in range(tc_max, 0, -1):
        if seq % d == 0:
            best = d
            break
    if best * 4 >= tc_max:
        return best, seq                   # exact tiling -> mask compiles out
    return tc_max, _round_up(seq, tc_max)  # pad the sequence, keep a static mask


# ----------------------------------------------------------------------------
# Pallas kernels
# ----------------------------------------------------------------------------
def dense_kernel(x_ref, w_ref, b_ref, o_ref):
    """o = x @ W + b  (bf16 MXU inputs, f32 accumulation)."""
    x = x_ref[...].astype(MXU_DTYPE)
    w = w_ref[...].astype(MXU_DTYPE)
    acc = jnp.dot(x, w, preferred_element_type=jnp.float32)
    o_ref[...] = (acc + b_ref[...]).astype(o_ref.dtype)


def rnn_layer_kernel(x_ref, wih_ref, b_ref, whh_ref, out_ref, hfin_ref,
                     h_scratch, pre_vmem, *, seq_valid, t_chunk, needs_mask):
    """One fused RNN layer, one (batch block x time chunk) grid step.

      pre = x_chunk @ W_ih + b      (one big MXU matmul into VMEM scratch)
      h_t = tanh(pre_t + h_{t-1} @ W_hh)   serial over the chunk's timesteps

    The carried hidden state lives in VMEM scratch across time chunks.
    """
    c = pl.program_id(1)

    @pl.when(c == 0)
    def _():
        h_scratch[...] = jnp.zeros_like(h_scratch)

    tc, bb, in_pad = x_ref.shape
    h_pad = whh_ref.shape[1]

    # Hoisted per-chunk input projection (no HBM round trip of `pre`).
    x2 = x_ref[...].astype(MXU_DTYPE).reshape(tc * bb, in_pad)
    pre = jnp.dot(x2, wih_ref[...].astype(MXU_DTYPE),
                  preferred_element_type=jnp.float32) + b_ref[...]
    pre_vmem[...] = pre.reshape(tc, bb, h_pad)

    # TODO(synk): pltpu.matmul_push_rhs here to keep W_hh resident in the MXU
    # across the serial loop (biggest remaining win on the recurrence).
    w_hh = whh_ref[...].astype(MXU_DTYPE)        # (h_pad, h_pad), hoisted

    def step(t, h):
        h_new = jnp.tanh(
            pre_vmem[t]
            + jnp.dot(h.astype(MXU_DTYPE), w_hh,
                      preferred_element_type=jnp.float32))
        if needs_mask:                            # static; absent when tc | seq
            valid = (c * t_chunk + t) < seq_valid
            h_new = jnp.where(valid, h_new, h)
        out_ref[t] = h_new.astype(out_ref.dtype)
        return h_new

    h_final = lax.fori_loop(0, t_chunk, step, h_scratch[...],
                            unroll=min(t_chunk, 8))
    h_scratch[...] = h_final

    @pl.when(c == pl.num_programs(1) - 1)
    def _():
        hfin_ref[...] = h_final.astype(hfin_ref.dtype)


# ----------------------------------------------------------------------------
# pallas_call wrappers
# ----------------------------------------------------------------------------
def run_dense(x, w, b):
    """x: (N, K), w: (K, M) bf16, b: (1, M) f32 -> (N, M) f32 (row+feature tiled)."""
    n, k = x.shape
    m = w.shape[1]
    xb = jnp.dtype(x.dtype).itemsize
    budget = int(_vmem_limit_bytes() * 0.75)

    tn = m if m <= 1024 else 512                  # lane-dense (>=128) output tiles
    fixed = k * tn * 2 + tn * 4                   # single-buffered weight + bias
    tr = (budget - fixed) // max(1, 2 * k * xb + 8 * tn)
    tr = max(SUBLANE, min(512, (tr // SUBLANE) * SUBLANE))
    tr = min(tr, _round_up(n, SUBLANE))

    grid = (pl.cdiv(m, tn), pl.cdiv(n, tr))       # feature axis outer so the weight
                                                  # block is reused across row tiles
    return pl.pallas_call(
        dense_kernel,
        out_shape=jax.ShapeDtypeStruct((n, m), jnp.float32),
        grid_spec=pltpu.PrefetchScalarGridSpec(
            num_scalar_prefetch=0,
            grid=grid,
            in_specs=[
                pl.BlockSpec((tr, k), lambda j, i: (i, 0)),
                pl.BlockSpec((k, tn), lambda j, i: (0, j),
                             pipeline_mode=pl.Buffered(1)),
                pl.BlockSpec((1, tn), lambda j, i: (0, j),
                             pipeline_mode=pl.Buffered(1)),
            ],
            out_specs=pl.BlockSpec((tr, tn), lambda j, i: (i, j)),
        ),
        compiler_params=pltpu.CompilerParams(
            dimension_semantics=("parallel", "parallel"),
            vmem_limit_bytes=_vmem_limit_bytes(),
        ),
    )(x, w, b)


def run_rnn_layer(x_tm, w_ih, b, w_hh, *, seq_valid, t_chunk):
    """x_tm: (seq_pad, batch_p, in_pad); returns (out_tm bf16, h_final f32)."""
    seq_pad, batch_p, in_pad = x_tm.shape
    h_pad = w_hh.shape[1]
    tc = t_chunk
    n_chunks = seq_pad // tc
    needs_mask = seq_pad != seq_valid

    # TODO(synk): on v7x (2 TensorCores) split batch_p into >=2 sublane-aligned
    # blocks along this leading 'parallel' axis to use both cores.
    nb = 1
    bb = batch_p

    kernel = functools.partial(rnn_layer_kernel, seq_valid=seq_valid,
                               t_chunk=tc, needs_mask=needs_mask)
    out_tm, h_fin = pl.pallas_call(
        kernel,
        out_shape=(
            jax.ShapeDtypeStruct((seq_pad, batch_p, h_pad), ACT_DTYPE),
            jax.ShapeDtypeStruct((batch_p, h_pad), jnp.float32),
        ),
        grid_spec=pltpu.PrefetchScalarGridSpec(
            num_scalar_prefetch=0,
            grid=(nb, n_chunks),
            in_specs=[
                pl.BlockSpec((tc, bb, in_pad), lambda bi, ci: (ci, bi, 0)),
                pl.BlockSpec((in_pad, h_pad), lambda bi, ci: (0, 0),
                             pipeline_mode=pl.Buffered(1)),
                pl.BlockSpec((1, h_pad), lambda bi, ci: (0, 0),
                             pipeline_mode=pl.Buffered(1)),
                pl.BlockSpec((h_pad, h_pad), lambda bi, ci: (0, 0),
                             pipeline_mode=pl.Buffered(1)),
            ],
            out_specs=[
                pl.BlockSpec((tc, bb, h_pad), lambda bi, ci: (ci, bi, 0)),
                pl.BlockSpec((bb, h_pad), lambda bi, ci: (bi, 0)),
            ],
            scratch_shapes=[
                pltpu.VMEM((bb, h_pad), jnp.float32),       # carried hidden state
                pltpu.VMEM((tc, bb, h_pad), jnp.float32),   # per-chunk pre-activations
            ],
        ),
        compiler_params=pltpu.CompilerParams(
            dimension_semantics=("parallel", "arbitrary"),
            vmem_limit_bytes=_vmem_limit_bytes(),
        ),
    )(x_tm, w_ih, b, w_hh)
    return out_tm, h_fin


# ----------------------------------------------------------------------------
# Forward pass (equivalent of RNN.forward)
# ----------------------------------------------------------------------------
@jax.jit
def rnn_forward(x, params):
    """x: (batch, seq, input_size) f32.

    Returns (out, hidden):
      out:    (batch*seq, output_size)
      hidden: (n_layers, batch, hidden_dim)
    """
    batch, seq, in_dim = x.shape
    hidden_dim = params["layers"][0][1].shape[0]
    out_dim = params["fc_w"].shape[1]

    h_pad = _round_up(hidden_dim, LANE)
    o_pad = _round_up(out_dim, LANE)
    in_pad0 = _round_up(in_dim, LANE)
    batch_p = _round_up(batch, SUBLANE)

    # One time chunk for all layers (worst-case operand widths in the budget).
    tc, seq_pad = _choose_time_chunk(seq, batch_p, max(in_pad0, h_pad), h_pad, 4)

    # Time-major, padded batch / lanes / (possibly) sequence.  Padding is inert:
    # padded hidden lanes stay exactly zero through the recurrence (tanh(0)=0),
    # padded batch rows / timesteps are masked or sliced off at the end.
    x_tm = jnp.transpose(x, (1, 0, 2))                       # (seq, batch, in)
    x_tm = _pad_to(x_tm, (seq_pad, batch_p, in_pad0))

    layer_in = x_tm                                          # f32 layer 0, bf16 after
    finals = []
    for (w_ih, w_hh, b) in params["layers"]:
        k_dim = layer_in.shape[-1]
        w_ih_p = _pad_to(w_ih, (k_dim, h_pad)).astype(MXU_DTYPE)
        w_hh_p = _pad_to(w_hh, (h_pad, h_pad)).astype(MXU_DTYPE)
        b_p = _pad_to(b, (1, h_pad))                         # f32
        layer_in, h_fin = run_rnn_layer(layer_in, w_ih_p, b_p, w_hh_p,
                                        seq_valid=seq, t_chunk=tc)
        finals.append(h_fin)

    hidden_out = jnp.stack(finals, axis=0)[:, :batch, :hidden_dim]

    # Final Linear on time-major flat activations (bf16 inputs); only the small
    # (rows, out_dim) result is re-ordered to batch-major.
    fc_w_p = _pad_to(params["fc_w"], (h_pad, o_pad)).astype(MXU_DTYPE)
    fc_b_p = _pad_to(params["fc_b"], (1, o_pad))
    out_tm = run_dense(layer_in.reshape(seq_pad * batch_p, h_pad), fc_w_p, fc_b_p)
    out_tm = out_tm.reshape(seq_pad, batch_p, o_pad)[:seq, :batch, :out_dim]
    out = jnp.transpose(out_tm, (1, 0, 2)).reshape(batch * seq, out_dim)
    return out, hidden_out


# ----------------------------------------------------------------------------
# Deterministic parameter init (PyTorch-style uniform(-1/sqrt(H), 1/sqrt(H)))
# ----------------------------------------------------------------------------
def init_params(key, input_size, output_size, hidden_dim, n_layers):
    bound = 1.0 / (hidden_dim ** 0.5)
    layers = []
    for l in range(n_layers):
        in_dim = input_size if l == 0 else hidden_dim
        key, k1, k2, k3, k4 = jax.random.split(key, 5)
        # Stored pre-transposed relative to PyTorch (kernels compute x @ W).
        w_ih = jax.random.uniform(k1, (in_dim, hidden_dim), jnp.float32, -bound, bound)
        w_hh = jax.random.uniform(k2, (hidden_dim, hidden_dim), jnp.float32, -bound, bound)
        b_ih = jax.random.uniform(k3, (1, hidden_dim), jnp.float32, -bound, bound)
        b_hh = jax.random.uniform(k4, (1, hidden_dim), jnp.float32, -bound, bound)
        layers.append((w_ih, w_hh, b_ih + b_hh))
    key, k5, k6 = jax.random.split(key, 3)
    fc_w = jax.random.uniform(k5, (hidden_dim, output_size), jnp.float32, -bound, bound)
    fc_b = jax.random.uniform(k6, (1, output_size), jnp.float32, -bound, bound)
    return {"layers": layers, "fc_w": fc_w, "fc_b": fc_b}


# ----------------------------------------------------------------------------
# Pure-JAX f32 reference (sanity check)
# ----------------------------------------------------------------------------
def rnn_forward_ref(x, params):
    batch, seq, _ = x.shape
    layer_in = x
    finals = []
    for (w_ih, w_hh, b) in params["layers"]:
        hidden = w_hh.shape[0]
        h = jnp.zeros((batch, hidden), jnp.float32)
        outs = []
        for t in range(seq):
            h = jnp.tanh(layer_in[:, t, :] @ w_ih + h @ w_hh + b)
            outs.append(h)
        layer_in = jnp.stack(outs, axis=1)
        finals.append(h)
    hidden_out = jnp.stack(finals, axis=0)
    out = layer_in.reshape(batch * seq, -1) @ params["fc_w"] + params["fc_b"]
    return out, hidden_out


if __name__ == "__main__":
    batch, seq = 2, 8
    input_size, hidden_dim, output_size, n_layers = 16, 32, 16, 2

    key = jax.random.PRNGKey(0)
    kx, kp = jax.random.split(key)
    x = jax.random.normal(kx, (batch, seq, input_size), jnp.float32)
    params = init_params(kp, input_size, output_size, hidden_dim, n_layers)

    out, hidden = rnn_forward(x, params)
    out, hidden = jax.block_until_ready((out, hidden))

    out_ref, hidden_ref = rnn_forward_ref(x, params)
    assert out.shape == (batch * seq, output_size)
    assert hidden.shape == (n_layers, batch, hidden_dim)
    # bf16 MXU inputs / bf16 inter-layer activations with f32 accumulation ->
    # relaxed tolerance vs the pure-f32 reference.
    assert jnp.allclose(out, out_ref, atol=2e-2, rtol=2e-2)
    assert jnp.allclose(hidden, hidden_ref, atol=2e-2, rtol=2e-2)

    print("KERNEL_OK")
</pallas_src>

<mosaic_0001>
module attributes {stable_mosaic.version = 11 : i64} {
  func.func @dense_kernel(%arg0: i32, %arg1: i32, %arg2: memref<64x128xbf16, #tpu.memory_space<vmem>>, %arg3: memref<128x128xbf16, #tpu.memory_space<vmem>>, %arg4: memref<1x128xf32, #tpu.memory_space<vmem>>, %arg5: memref<64x128xf32, #tpu.memory_space<vmem>>) attributes {dimension_semantics = [#tpu.dimension_semantics<parallel>, #tpu.dimension_semantics<parallel>], iteration_bounds = array<i64: 1, 1>, scalar_prefetch = 0 : i64, scratch_operands = 0 : i64, tpu.core_type = #tpu.core_type<tc>, window_params = [{transform_indices = @transform_0, window_bounds = array<i64: 64, 128>}, {pipeline_mode = #tpu.pipeline_mode<synchronous>, transform_indices = @transform_1, window_bounds = array<i64: 128, 128>}, {pipeline_mode = #tpu.pipeline_mode<synchronous>, transform_indices = @transform_2, window_bounds = array<i64: 1, 128>}, {transform_indices = @transform_3, window_bounds = array<i64: 64, 128>}]} {
    %c0 = arith.constant 0 : index
    %c0_0 = arith.constant 0 : index
    %0 = vector.load %arg2[%c0, %c0_0] : memref<64x128xbf16, #tpu.memory_space<vmem>>, vector<64x128xbf16>
    %c0_1 = arith.constant 0 : index
    %c0_2 = arith.constant 0 : index
    %1 = vector.load %arg3[%c0_1, %c0_2] : memref<128x128xbf16, #tpu.memory_space<vmem>>, vector<128x128xbf16>
    %cst = arith.constant dense<0.000000e+00> : vector<64x128xf32>
    %2 = tpu.matmul %0, %1, %cst {dimension_numbers = #tpu.dot_dimension_numbers<[1], [0], [0], [1], [0, 0, 1, 1], [], []>} : vector<64x128xbf16>, vector<128x128xbf16>, vector<64x128xf32> -> vector<64x128xf32>
    %c0_3 = arith.constant 0 : index
    %c0_4 = arith.constant 0 : index
    %3 = vector.load %arg4[%c0_3, %c0_4] : memref<1x128xf32, #tpu.memory_space<vmem>>, vector<1x128xf32>
    %4 = vector.broadcast %3 : vector<1x128xf32> to vector<64x128xf32>
    %5 = arith.addf %2, %4 : vector<64x128xf32>
    %c0_5 = arith.constant 0 : index
    %c0_6 = arith.constant 0 : index
    %6 = vector.load %arg5[%c0_5, %c0_6] : memref<64x128xf32, #tpu.memory_space<vmem>>, vector<64x128xf32>
    tpu.vector_store %arg5[%c0_5, %c0_6], %5 {strides = array<i32>} : memref<64x128xf32, #tpu.memory_space<vmem>>, vector<64x128xf32>,
    return
  }
  func.func @transform_0(%arg0: i32, %arg1: i32) -> (i32, i32) {
    %c0_i32 = arith.constant 0 : i32
    %c0_i32_0 = arith.constant 0 : i32
    return %arg1, %c0_i32 : i32, i32
  }
  func.func @transform_1(%arg0: i32, %arg1: i32) -> (i32, i32) {
    %c0_i32 = arith.constant 0 : i32
    %c0_i32_0 = arith.constant 0 : i32
    return %c0_i32, %arg0 : i32, i32
  }
  func.func @transform_2(%arg0: i32, %arg1: i32) -> (i32, i32) {
    %c0_i32 = arith.constant 0 : i32
    %c0_i32_0 = arith.constant 0 : i32
    return %c0_i32, %arg0 : i32, i32
  }
  func.func @transform_3(%arg0: i32, %arg1: i32) -> (i32, i32) {
    %c0_i32 = arith.constant 0 : i32
    return %arg1, %arg0 : i32, i32
  }
}

module attributes {stable_mosaic.version = 11 : i64} {
  func.func @rnn_layer_kernel(%arg0: i32, %arg1: i32, %arg2: memref<8x8x128xf32, #tpu.memory_space<vmem>>, %arg3: memref<128x128xbf16, #tpu.memory_space<vmem>>, %arg4: memref<1x128xf32, #tpu.memory_space<vmem>>, %arg5: memref<128x128xbf16, #tpu.memory_space<vmem>>, %arg6: memref<8x8x128xbf16, #tpu.memory_space<vmem>>, %arg7: memref<8x128xf32, #tpu.memory_space<vmem>>, %arg8: memref<8x128xf32, #tpu.memory_space<vmem>>, %arg9: memref<8x8x128xf32, #tpu.memory_space<vmem>>) attributes {dimension_semantics = [#tpu.dimension_semantics<parallel>, #tpu.dimension_semantics<arbitrary>], iteration_bounds = array<i64: 1, 1>, scalar_prefetch = 0 : i64, scratch_operands = 2 : i64, tpu.core_type = #tpu.core_type<tc>, window_params = [{transform_indices = @transform_0, window_bounds = array<i64: 8, 8, 128>}, {pipeline_mode = #tpu.pipeline_mode<synchronous>, transform_indices = @transform_1, window_bounds = array<i64: 128, 128>}, {pipeline_mode = #tpu.pipeline_mode<synchronous>, transform_indices = @transform_2, window_bounds = array<i64: 1, 128>}, {pipeline_mode = #tpu.pipeline_mode<synchronous>, transform_indices = @transform_3, window_bounds = array<i64: 128, 128>}, {transform_indices = @transform_4, window_bounds = array<i64: 8, 8, 128>}, {transform_indices = @transform_5, window_bounds = array<i64: 8, 128>}]} {
    %c0_i32 = arith.constant 0 : i32
    %0 = arith.cmpi eq, %arg1, %c0_i32 : i32
    %1 = arith.extui %0 : i1 to i32
    %c0_i32_0 = arith.constant 0 : i32
    %2 = arith.cmpi ne, %1, %c0_i32_0 : i32
    scf.if %2 {
      %cst_59 = arith.constant 0.000000e+00 : f32
      %115 = vector.broadcast %cst_59 : f32 to vector<8x128xf32>
      %c0_60 = arith.constant 0 : index
      %c0_61 = arith.constant 0 : index
      %116 = vector.load %arg8[%c0_60, %c0_61] : memref<8x128xf32, #tpu.memory_space<vmem>>, vector<8x128xf32>
      tpu.vector_store %arg8[%c0_60, %c0_61], %115 {strides = array<i32>} : memref<8x128xf32, #tpu.memory_space<vmem>>, vector<8x128xf32>,
    } else {
    }
    %c0 = arith.constant 0 : index
    %c0_1 = arith.constant 0 : index
    %c0_2 = arith.constant 0 : index
    %3 = vector.load %arg2[%c0, %c0_1, %c0_2] : memref<8x8x128xf32, #tpu.memory_space<vmem>>, vector<8x8x128xf32>
    %4 = arith.truncf %3 : vector<8x8x128xf32> to vector<8x8x128xbf16>
    %5 = vector.shape_cast %4 : vector<8x8x128xbf16> to vector<64x128xbf16>
    %c0_3 = arith.constant 0 : index
    %c0_4 = arith.constant 0 : index
    %6 = vector.load %arg3[%c0_3, %c0_4] : memref<128x128xbf16, #tpu.memory_space<vmem>>, vector<128x128xbf16>
    %cst = arith.constant dense<0.000000e+00> : vector<64x128xf32>
    %7 = tpu.matmul %5, %6, %cst {dimension_numbers = #tpu.dot_dimension_numbers<[1], [0], [0], [1], [0, 0, 1, 1], [], []>} : vector<64x128xbf16>, vector<128x128xbf16>, vector<64x128xf32> -> vector<64x128xf32>
    %c0_5 = arith.constant 0 : index
    %c0_6 = arith.constant 0 : index
    %8 = vector.load %arg4[%c0_5, %c0_6] : memref<1x128xf32, #tpu.memory_space<vmem>>, vector<1x128xf32>
    %9 = vector.broadcast %8 : vector<1x128xf32> to vector<64x128xf32>
    %10 = arith.addf %7, %9 : vector<64x128xf32>
    %11 = vector.shape_cast %10 : vector<64x128xf32> to vector<8x8x128xf32>
    %c0_7 = arith.constant 0 : index
    %c0_8 = arith.constant 0 : index
    %c0_9 = arith.constant 0 : index
    %12 = vector.load %arg9[%c0_7, %c0_8, %c0_9] : memref<8x8x128xf32, #tpu.memory_space<vmem>>, vector<8x8x128xf32>
    tpu.vector_store %arg9[%c0_7, %c0_8, %c0_9], %11 {strides = array<i32>} : memref<8x8x128xf32, #tpu.memory_space<vmem>>, vector<8x8x128xf32>,
    %c0_10 = arith.constant 0 : index
    %c0_11 = arith.constant 0 : index
    %13 = vector.load %arg5[%c0_10, %c0_11] : memref<128x128xbf16, #tpu.memory_space<vmem>>, vector<128x128xbf16>
    %c0_12 = arith.constant 0 : index
    %c0_13 = arith.constant 0 : index
    %14 = vector.load %arg8[%c0_12, %c0_13] : memref<8x128xf32, #tpu.memory_space<vmem>>, vector<8x128xf32>
    %c0_i32_14 = arith.constant 0 : i32
    %15 = arith.index_cast %c0_i32_14 : i32 to index
    %c0_15 = arith.constant 0 : index
    %c0_16 = arith.constant 0 : index
    %16 = vector.load %arg9[%15, %c0_15, %c0_16] : memref<8x8x128xf32, #tpu.memory_space<vmem>>, vector<1x8x128xf32>
    %17 = vector.shape_cast %16 : vector<1x8x128xf32> to vector<8x128xf32>
    %18 = arith.truncf %14 : vector<8x128xf32> to vector<8x128xbf16>
    %cst_17 = arith.constant dense<0.000000e+00> : vector<8x128xf32>
    %19 = tpu.matmul %18, %13, %cst_17 {dimension_numbers = #tpu.dot_dimension_numbers<[1], [0], [0], [1], [0, 0, 1, 1], [], []>} : vector<8x128xbf16>, vector<128x128xbf16>, vector<8x128xf32> -> vector<8x128xf32>
    %20 = arith.addf %17, %19 : vector<8x128xf32>
    %21 = math.tanh %20 : vector<8x128xf32>
    %22 = arith.truncf %21 : vector<8x128xf32> to vector<8x128xbf16>
    %23 = arith.index_cast %c0_i32_14 : i32 to index
    %c0_18 = arith.constant 0 : index
    %c0_19 = arith.constant 0 : index
    %24 = vector.load %arg6[%23, %c0_18, %c0_19] : memref<8x8x128xbf16, #tpu.memory_space<vmem>>, vector<1x8x128xbf16>
    %25 = vector.shape_cast %24 : vector<1x8x128xbf16> to vector<8x128xbf16>
    %26 = vector.shape_cast %22 : vector<8x128xbf16> to vector<1x8x128xbf16>
    tpu.vector_store %arg6[%23, %c0_18, %c0_19], %26 {strides = array<i32>} : memref<8x8x128xbf16, #tpu.memory_space<vmem>>, vector<1x8x128xbf16>,
    %c1_i32 = arith.constant 1 : i32
    %27 = arith.index_cast %c1_i32 : i32 to index
    %c0_20 = arith.constant 0 : index
    %c0_21 = arith.constant 0 : index
    %28 = vector.load %arg9[%27, %c0_20, %c0_21] : memref<8x8x128xf32, #tpu.memory_space<vmem>>, vector<1x8x128xf32>
    %29 = vector.shape_cast %28 : vector<1x8x128xf32> to vector<8x128xf32>
    %30 = arith.truncf %21 : vector<8x128xf32> to vector<8x128xbf16>
    %cst_22 = arith.constant dense<0.000000e+00> : vector<8x128xf32>
    %31 = tpu.matmul %30, %13, %cst_22 {dimension_numbers = #tpu.dot_dimension_numbers<[1], [0], [0], [1], [0, 0, 1, 1], [], []>} : vector<8x128xbf16>, vector<128x128xbf16>, vector<8x128xf32> -> vector<8x128xf32>
    %32 = arith.addf %29, %31 : vector<8x128xf32>
    %33 = math.tanh %32 : vector<8x128xf32>
    %34 = arith.truncf %33 : vector<8x128xf32> to vector<8x128xbf16>
    %35 = arith.index_cast %c1_i32 : i32 to index
    %c0_23 = arith.constant 0 : index
    %c0_24 = arith.constant 0 : index
    %36 = vector.load %arg6[%35, %c0_23, %c0_24] : memref<8x8x128xbf16, #tpu.memory_space<vmem>>, vector<1x8x128xbf16>
    %37 = vector.shape_cast %36 : vector<1x8x128xbf16> to vector<8x128xbf16>
    %38 = vector.shape_cast %34 : vector<8x128xbf16> to vector<1x8x128xbf16>
    tpu.vector_store %arg6[%35, %c0_23, %c0_24], %38 {strides = array<i32>} : memref<8x8x128xbf16, #tpu.memory_space<vmem>>, vector<1x8x128xbf16>,
    %c2_i32 = arith.constant 2 : i32
    %39 = arith.index_cast %c2_i32 : i32 to index
    %c0_25 = arith.constant 0 : index
    %c0_26 = arith.constant 0 : index
    %40 = vector.load %arg9[%39, %c0_25, %c0_26] : memref<8x8x128xf32, #tpu.memory_space<vmem>>, vector<1x8x128xf32>
    %41 = vector.shape_cast %40 : vector<1x8x128xf32> to vector<8x128xf32>
    %42 = arith.truncf %33 : vector<8x128xf32> to vector<8x128xbf16>
    %cst_27 = arith.constant dense<0.000000e+00> : vector<8x128xf32>
    %43 = tpu.matmul %42, %13, %cst_27 {dimension_numbers = #tpu.dot_dimension_numbers<[1], [0], [0], [1], [0, 0, 1, 1], [], []>} : vector<8x128xbf16>, vector<128x128xbf16>, vector<8x128xf32> -> vector<8x128xf32>
    %44 = arith.addf %41, %43 : vector<8x128xf32>
    %45 = math.tanh %44 : vector<8x128xf32>
    %46 = arith.truncf %45 : vector<8x128xf32> to vector<8x128xbf16>
    %47 = arith.index_cast %c2_i32 : i32 to index
    %c0_28 = arith.constant 0 : index
    %c0_29 = arith.constant 0 : index
    %48 = vector.load %arg6[%47, %c0_28, %c0_29] : memref<8x8x128xbf16, #tpu.memory_space<vmem>>, vector<1x8x128xbf16>
    %49 = vector.shape_cast %48 : vector<1x8x128xbf16> to vector<8x128xbf16>
    %50 = vector.shape_cast %46 : vector<8x128xbf16> to vector<1x8x128xbf16>
    tpu.vector_store %arg6[%47, %c0_28, %c0_29], %50 {strides = array<i32>} : memref<8x8x128xbf16, #tpu.memory_space<vmem>>, vector<1x8x128xbf16>,
    %c3_i32 = arith.constant 3 : i32
    %51 = arith.index_cast %c3_i32 : i32 to index
    %c0_30 = arith.constant 0 : index
    %c0_31 = arith.constant 0 : index
    %52 = vector.load %arg9[%51, %c0_30, %c0_31] : memref<8x8x128xf32, #tpu.memory_space<vmem>>, vector<1x8x128xf32>
    %53 = vector.shape_cast %52 : vector<1x8x128xf32> to vector<8x128xf32>
    %54 = arith.truncf %45 : vector<8x128xf32> to vector<8x128xbf16>
    %cst_32 = arith.constant dense<0.000000e+00> : vector<8x128xf32>
    %55 = tpu.matmul %54, %13, %cst_32 {dimension_numbers = #tpu.dot_dimension_numbers<[1], [0], [0], [1], [0, 0, 1, 1], [], []>} : vector<8x128xbf16>, vector<128x128xbf16>, vector<8x128xf32> -> vector<8x128xf32>
    %56 = arith.addf %53, %55 : vector<8x128xf32>
    %57 = math.tanh %56 : vector<8x128xf32>
    %58 = arith.truncf %57 : vector<8x128xf32> to vector<8x128xbf16>
    %59 = arith.index_cast %c3_i32 : i32 to index
    %c0_33 = arith.constant 0 : index
    %c0_34 = arith.constant 0 : index
    %60 = vector.load %arg6[%59, %c0_33, %c0_34] : memref<8x8x128xbf16, #tpu.memory_space<vmem>>, vector<1x8x128xbf16>
    %61 = vector.shape_cast %60 : vector<1x8x128xbf16> to vector<8x128xbf16>
    %62 = vector.shape_cast %58 : vector<8x128xbf16> to vector<1x8x128xbf16>
    tpu.vector_store %arg6[%59, %c0_33, %c0_34], %62 {strides = array<i32>} : memref<8x8x128xbf16, #tpu.memory_space<vmem>>, vector<1x8x128xbf16>,
    %c4_i32 = arith.constant 4 : i32
    %63 = arith.index_cast %c4_i32 : i32 to index
    %c0_35 = arith.constant 0 : index
    %c0_36 = arith.constant 0 : index
    %64 = vector.load %arg9[%63, %c0_35, %c0_36] : memref<8x8x128xf32, #tpu.memory_space<vmem>>, vector<1x8x128xf32>
    %65 = vector.shape_cast %64 : vector<1x8x128xf32> to vector<8x128xf32>
    %66 = arith.truncf %57 : vector<8x128xf32> to vector<8x128xbf16>
    %cst_37 = arith.constant dense<0.000000e+00> : vector<8x128xf32>
    %67 = tpu.matmul %66, %13, %cst_37 {dimension_numbers = #tpu.dot_dimension_numbers<[1], [0], [0], [1], [0, 0, 1, 1], [], []>} : vector<8x128xbf16>, vector<128x128xbf16>, vector<8x128xf32> -> vector<8x128xf32>
    %68 = arith.addf %65, %67 : vector<8x128xf32>
    %69 = math.tanh %68 : vector<8x128xf32>
    %70 = arith.truncf %69 : vector<8x128xf32> to vector<8x128xbf16>
    %71 = arith.index_cast %c4_i32 : i32 to index
    %c0_38 = arith.constant 0 : index
    %c0_39 = arith.constant 0 : index
    %72 = vector.load %arg6[%71, %c0_38, %c0_39] : memref<8x8x128xbf16, #tpu.memory_space<vmem>>, vector<1x8x128xbf16>
    %73 = vector.shape_cast %72 : vector<1x8x128xbf16> to vector<8x128xbf16>
    %74 = vector.shape_cast %70 : vector<8x128xbf16> to vector<1x8x128xbf16>
    tpu.vector_store %arg6[%71, %c0_38, %c0_39], %74 {strides = array<i32>} : memref<8x8x128xbf16, #tpu.memory_space<vmem>>, vector<1x8x128xbf16>,
    %c5_i32 = arith.constant 5 : i32
    %75 = arith.index_cast %c5_i32 : i32 to index
    %c0_40 = arith.constant 0 : index
    %c0_41 = arith.constant 0 : index
    %76 = vector.load %arg9[%75, %c0_40, %c0_41] : memref<8x8x128xf32, #tpu.memory_space<vmem>>, vector<1x8x128xf32>
    %77 = vector.shape_cast %76 : vector<1x8x128xf32> to vector<8x128xf32>
    %78 = arith.truncf %69 : vector<8x128xf32> to vector<8x128xbf16>
    %cst_42 = arith.constant dense<0.000000e+00> : vector<8x128xf32>
    %79 = tpu.matmul %78, %13, %cst_42 {dimension_numbers = #tpu.dot_dimension_numbers<[1], [0], [0], [1], [0, 0, 1, 1], [], []>} : vector<8x128xbf16>, vector<128x128xbf16>, vector<8x128xf32> -> vector<8x128xf32>
    %80 = arith.addf %77, %79 : vector<8x128xf32>
    %81 = math.tanh %80 : vector<8x128xf32>
    %82 = arith.truncf %81 : vector<8x128xf32> to vector<8x128xbf16>
    %83 = arith.index_cast %c5_i32 : i32 to index
    %c0_43 = arith.constant 0 : index
    %c0_44 = arith.constant 0 : index
    %84 = vector.load %arg6[%83, %c0_43, %c0_44] : memref<8x8x128xbf16, #tpu.memory_space<vmem>>, vector<1x8x128xbf16>
    %85 = vector.shape_cast %84 : vector<1x8x128xbf16> to vector<8x128xbf16>
    %86 = vector.shape_cast %82 : vector<8x128xbf16> to vector<1x8x128xbf16>
    tpu.vector_store %arg6[%83, %c0_43, %c0_44], %86 {strides = array<i32>} : memref<8x8x128xbf16, #tpu.memory_space<vmem>>, vector<1x8x128xbf16>,
    %c6_i32 = arith.constant 6 : i32
    %87 = arith.index_cast %c6_i32 : i32 to index
    %c0_45 = arith.constant 0 : index
    %c0_46 = arith.constant 0 : index
    %88 = vector.load %arg9[%87, %c0_45, %c0_46] : memref<8x8x128xf32, #tpu.memory_space<vmem>>, vector<1x8x128xf32>
    %89 = vector.shape_cast %88 : vector<1x8x128xf32> to vector<8x128xf32>
    %90 = arith.truncf %81 : vector<8x128xf32> to vector<8x128xbf16>
    %cst_47 = arith.constant dense<0.000000e+00> : vector<8x128xf32>
    %91 = tpu.matmul %90, %13, %cst_47 {dimension_numbers = #tpu.dot_dimension_numbers<[1], [0], [0], [1], [0, 0, 1, 1], [], []>} : vector<8x128xbf16>, vector<128x128xbf16>, vector<8x128xf32> -> vector<8x128xf32>
    %92 = arith.addf %89, %91 : vector<8x128xf32>
    %93 = math.tanh %92 : vector<8x128xf32>
    %94 = arith.truncf %93 : vector<8x128xf32> to vector<8x128xbf16>
    %95 = arith.index_cast %c6_i32 : i32 to index
    %c0_48 = arith.constant 0 : index
    %c0_49 = arith.constant 0 : index
    %96 = vector.load %arg6[%95, %c0_48, %c0_49] : memref<8x8x128xbf16, #tpu.memory_space<vmem>>, vector<1x8x128xbf16>
    %97 = vector.shape_cast %96 : vector<1x8x128xbf16> to vector<8x128xbf16>
    %98 = vector.shape_cast %94 : vector<8x128xbf16> to vector<1x8x128xbf16>
    tpu.vector_store %arg6[%95, %c0_48, %c0_49], %98 {strides = array<i32>} : memref<8x8x128xbf16, #tpu.memory_space<vmem>>, vector<1x8x128xbf16>,
    %c7_i32 = arith.constant 7 : i32
    %99 = arith.index_cast %c7_i32 : i32 to index
    %c0_50 = arith.constant 0 : index
    %c0_51 = arith.constant 0 : index
    %100 = vector.load %arg9[%99, %c0_50, %c0_51] : memref<8x8x128xf32, #tpu.memory_space<vmem>>, vector<1x8x128xf32>
    %101 = vector.shape_cast %100 : vector<1x8x128xf32> to vector<8x128xf32>
    %102 = arith.truncf %93 : vector<8x128xf32> to vector<8x128xbf16>
    %cst_52 = arith.constant dense<0.000000e+00> : vector<8x128xf32>
    %103 = tpu.matmul %102, %13, %cst_52 {dimension_numbers = #tpu.dot_dimension_numbers<[1], [0], [0], [1], [0, 0, 1, 1], [], []>} : vector<8x128xbf16>, vector<128x128xbf16>, vector<8x128xf32> -> vector<8x128xf32>
    %104 = arith.addf %101, %103 : vector<8x128xf32>
    %105 = math.tanh %104 : vector<8x128xf32>
    %106 = arith.truncf %105 : vector<8x128xf32> to vector<8x128xbf16>
    %107 = arith.index_cast %c7_i32 : i32 to index
    %c0_53 = arith.constant 0 : index
    %c0_54 = arith.constant 0 : index
    %108 = vector.load %arg6[%107, %c0_53, %c0_54] : memref<8x8x128xbf16, #tpu.memory_space<vmem>>, vector<1x8x128xbf16>
    %109 = vector.shape_cast %108 : vector<1x8x128xbf16> to vector<8x128xbf16>
    %110 = vector.shape_cast %106 : vector<8x128xbf16> to vector<1x8x128xbf16>
    tpu.vector_store %arg6[%107, %c0_53, %c0_54], %110 {strides = array<i32>} : memref<8x8x128xbf16, #tpu.memory_space<vmem>>, vector<1x8x128xbf16>,
    %c8_i32 = arith.constant 8 : i32
    %c0_55 = arith.constant 0 : index
    %c0_56 = arith.constant 0 : index
    %111 = vector.load %arg8[%c0_55, %c0_56] : memref<8x128xf32, #tpu.memory_space<vmem>>, vector<8x128xf32>
    tpu.vector_store %arg8[%c0_55, %c0_56], %105 {strides = array<i32>} : memref<8x128xf32, #tpu.memory_space<vmem>>, vector<8x128xf32>,
    %c0_i32_57 = arith.constant 0 : i32
    %112 = arith.cmpi eq, %arg1, %c0_i32_57 : i32
    %113 = arith.extui %112 : i1 to i32
    %c0_i32_58 = arith.constant 0 : i32
    %114 = arith.cmpi ne, %113, %c0_i32_58 : i32
    scf.if %114 {
      %c0_59 = arith.constant 0 : index
      %c0_60 = arith.constant 0 : index
      %115 = vector.load %arg7[%c0_59, %c0_60] : memref<8x128xf32, #tpu.memory_space<vmem>>, vector<8x128xf32>
      tpu.vector_store %arg7[%c0_59, %c0_60], %105 {strides = array<i32>} : memref<8x128xf32, #tpu.memory_space<vmem>>, vector<8x128xf32>,
    } else {
    }
    return
  }
  func.func @transform_0(%arg0: i32, %arg1: i32) -> (i32, i32, i32) {
    %c0_i32 = arith.constant 0 : i32
    %c0_i32_0 = arith.constant 0 : i32
    return %arg1, %arg0, %c0_i32 : i32, i32, i32
  }
  func.func @transform_1(%arg0: i32, %arg1: i32) -> (i32, i32) {
    %c0_i32 = arith.constant 0 : i32
    %c0_i32_0 = arith.constant 0 : i32
    %c0_i32_1 = arith.constant 0 : i32
    return %c0_i32, %c0_i32_0 : i32, i32
  }
  func.func @transform_2(%arg0: i32, %arg1: i32) -> (i32, i32) {
    %c0_i32 = arith.constant 0 : i32
    %c0_i32_0 = arith.constant 0 : i32
    %c0_i32_1 = arith.constant 0 : i32
    return %c0_i32, %c0_i32_0 : i32, i32
  }
  func.func @transform_3(%arg0: i32, %arg1: i32) -> (i32, i32) {
    %c0_i32 = arith.constant 0 : i32
    %c0_i32_0 = arith.constant 0 : i32
    %c0_i32_1 = arith.constant 0 : i32
    return %c0_i32, %c0_i32_0 : i32, i32
  }
  func.func @transform_4(%arg0: i32, %arg1: i32) -> (i32, i32, i32) {
    %c0_i32 = arith.constant 0 : i32
    %c0_i32_0 = arith.constant 0 : i32
    return %arg1, %arg0, %c0_i32 : i32, i32, i32
  }
  func.func @transform_5(%arg0: i32, %arg1: i32) -> (i32, i32) {
    %c0_i32 = arith.constant 0 : i32
    %c0_i32_0 = arith.constant 0 : i32
    return %arg0, %c0_i32 : i32, i32
  }
}

module attributes {stable_mosaic.version = 11 : i64} {
  func.func @rnn_layer_kernel(%arg0: i32, %arg1: i32, %arg2: memref<8x8x128xbf16, #tpu.memory_space<vmem>>, %arg3: memref<128x128xbf16, #tpu.memory_space<vmem>>, %arg4: memref<1x128xf32, #tpu.memory_space<vmem>>, %arg5: memref<128x128xbf16, #tpu.memory_space<vmem>>, %arg6: memref<8x8x128xbf16, #tpu.memory_space<vmem>>, %arg7: memref<8x128xf32, #tpu.memory_space<vmem>>, %arg8: memref<8x128xf32, #tpu.memory_space<vmem>>, %arg9: memref<8x8x128xf32, #tpu.memory_space<vmem>>) attributes {dimension_semantics = [#tpu.dimension_semantics<parallel>, #tpu.dimension_semantics<arbitrary>], iteration_bounds = array<i64: 1, 1>, scalar_prefetch = 0 : i64, scratch_operands = 2 : i64, tpu.core_type = #tpu.core_type<tc>, window_params = [{transform_indices = @transform_0, window_bounds = array<i64: 8, 8, 128>}, {pipeline_mode = #tpu.pipeline_mode<synchronous>, transform_indices = @transform_1, window_bounds = array<i64: 128, 128>}, {pipeline_mode = #tpu.pipeline_mode<synchronous>, transform_indices = @transform_2, window_bounds = array<i64: 1, 128>}, {pipeline_mode = #tpu.pipeline_mode<synchronous>, transform_indices = @transform_3, window_bounds = array<i64: 128, 128>}, {transform_indices = @transform_4, window_bounds = array<i64: 8, 8, 128>}, {transform_indices = @transform_5, window_bounds = array<i64: 8, 128>}]} {
    %c0_i32 = arith.constant 0 : i32
    %0 = arith.cmpi eq, %arg1, %c0_i32 : i32
    %1 = arith.extui %0 : i1 to i32
    %c0_i32_0 = arith.constant 0 : i32
    %2 = arith.cmpi ne, %1, %c0_i32_0 : i32
    scf.if %2 {
      %cst_59 = arith.constant 0.000000e+00 : f32
      %114 = vector.broadcast %cst_59 : f32 to vector<8x128xf32>
      %c0_60 = arith.constant 0 : index
      %c0_61 = arith.constant 0 : index
      %115 = vector.load %arg8[%c0_60, %c0_61] : memref<8x128xf32, #tpu.memory_space<vmem>>, vector<8x128xf32>
      tpu.vector_store %arg8[%c0_60, %c0_61], %114 {strides = array<i32>} : memref<8x128xf32, #tpu.memory_space<vmem>>, vector<8x128xf32>,
    } else {
    }
    %c0 = arith.constant 0 : index
    %c0_1 = arith.constant 0 : index
    %c0_2 = arith.constant 0 : index
    %3 = vector.load %arg2[%c0, %c0_1, %c0_2] : memref<8x8x128xbf16, #tpu.memory_space<vmem>>, vector<8x8x128xbf16>
    %4 = vector.shape_cast %3 : vector<8x8x128xbf16> to vector<64x128xbf16>
    %c0_3 = arith.constant 0 : index
    %c0_4 = arith.constant 0 : index
    %5 = vector.load %arg3[%c0_3, %c0_4] : memref<128x128xbf16, #tpu.memory_space<vmem>>, vector<128x128xbf16>
    %cst = arith.constant dense<0.000000e+00> : vector<64x128xf32>
    %6 = tpu.matmul %4, %5, %cst {dimension_numbers = #tpu.dot_dimension_numbers<[1], [0], [0], [1], [0, 0, 1, 1], [], []>} : vector<64x128xbf16>, vector<128x128xbf16>, vector<64x128xf32> -> vector<64x128xf32>
    %c0_5 = arith.constant 0 : index
    %c0_6 = arith.constant 0 : index
    %7 = vector.load %arg4[%c0_5, %c0_6] : memref<1x128xf32, #tpu.memory_space<vmem>>, vector<1x128xf32>
    %8 = vector.broadcast %7 : vector<1x128xf32> to vector<64x128xf32>
    %9 = arith.addf %6, %8 : vector<64x128xf32>
    %10 = vector.shape_cast %9 : vector<64x128xf32> to vector<8x8x128xf32>
    %c0_7 = arith.constant 0 : index
    %c0_8 = arith.constant 0 : index
    %c0_9 = arith.constant 0 : index
    %11 = vector.load %arg9[%c0_7, %c0_8, %c0_9] : memref<8x8x128xf32, #tpu.memory_space<vmem>>, vector<8x8x128xf32>
    tpu.vector_store %arg9[%c0_7, %c0_8, %c0_9], %10 {strides = array<i32>} : memref<8x8x128xf32, #tpu.memory_space<vmem>>, vector<8x8x128xf32>,
    %c0_10 = arith.constant 0 : index
    %c0_11 = arith.constant 0 : index
    %12 = vector.load %arg5[%c0_10, %c0_11] : memref<128x128xbf16, #tpu.memory_space<vmem>>, vector<128x128xbf16>
    %c0_12 = arith.constant 0 : index
    %c0_13 = arith.constant 0 : index
    %13 = vector.load %arg8[%c0_12, %c0_13] : memref<8x128xf32, #tpu.memory_space<vmem>>, vector<8x128xf32>
    %c0_i32_14 = arith.constant 0 : i32
    %14 = arith.index_cast %c0_i32_14 : i32 to index
    %c0_15 = arith.constant 0 : index
    %c0_16 = arith.constant 0 : index
    %15 = vector.load %arg9[%14, %c0_15, %c0_16] : memref<8x8x128xf32, #tpu.memory_space<vmem>>, vector<1x8x128xf32>
    %16 = vector.shape_cast %15 : vector<1x8x128xf32> to vector<8x128xf32>
    %17 = arith.truncf %13 : vector<8x128xf32> to vector<8x128xbf16>
    %cst_17 = arith.constant dense<0.000000e+00> : vector<8x128xf32>
    %18 = tpu.matmul %17, %12, %cst_17 {dimension_numbers = #tpu.dot_dimension_numbers<[1], [0], [0], [1], [0, 0, 1, 1], [], []>} : vector<8x128xbf16>, vector<128x128xbf16>, vector<8x128xf32> -> vector<8x128xf32>
    %19 = arith.addf %16, %18 : vector<8x128xf32>
    %20 = math.tanh %19 : vector<8x128xf32>
    %21 = arith.truncf %20 : vector<8x128xf32> to vector<8x128xbf16>
    %22 = arith.index_cast %c0_i32_14 : i32 to index
    %c0_18 = arith.constant 0 : index
    %c0_19 = arith.constant 0 : index
    %23 = vector.load %arg6[%22, %c0_18, %c0_19] : memref<8x8x128xbf16, #tpu.memory_space<vmem>>, vector<1x8x128xbf16>
    %24 = vector.shape_cast %23 : vector<1x8x128xbf16> to vector<8x128xbf16>
    %25 = vector.shape_cast %21 : vector<8x128xbf16> to vector<1x8x128xbf16>
    tpu.vector_store %arg6[%22, %c0_18, %c0_19], %25 {strides = array<i32>} : memref<8x8x128xbf16, #tpu.memory_space<vmem>>, vector<1x8x128xbf16>,
    %c1_i32 = arith.constant 1 : i32
    %26 = arith.index_cast %c1_i32 : i32 to index
    %c0_20 = arith.constant 0 : index
    %c0_21 = arith.constant 0 : index
    %27 = vector.load %arg9[%26, %c0_20, %c0_21] : memref<8x8x128xf32, #tpu.memory_space<vmem>>, vector<1x8x128xf32>
    %28 = vector.shape_cast %27 : vector<1x8x128xf32> to vector<8x128xf32>
    %29 = arith.truncf %20 : vector<8x128xf32> to vector<8x128xbf16>
    %cst_22 = arith.constant dense<0.000000e+00> : vector<8x128xf32>
    %30 = tpu.matmul %29, %12, %cst_22 {dimension_numbers = #tpu.dot_dimension_numbers<[1], [0], [0], [1], [0, 0, 1, 1], [], []>} : vector<8x128xbf16>, vector<128x128xbf16>, vector<8x128xf32> -> vector<8x128xf32>
    %31 = arith.addf %28, %30 : vector<8x128xf32>
    %32 = math.tanh %31 : vector<8x128xf32>
    %33 = arith.truncf %32 : vector<8x128xf32> to vector<8x128xbf16>
    %34 = arith.index_cast %c1_i32 : i32 to index
    %c0_23 = arith.constant 0 : index
    %c0_24 = arith.constant 0 : index
    %35 = vector.load %arg6[%34, %c0_23, %c0_24] : memref<8x8x128xbf16, #tpu.memory_space<vmem>>, vector<1x8x128xbf16>
    %36 = vector.shape_cast %35 : vector<1x8x128xbf16> to vector<8x128xbf16>
    %37 = vector.shape_cast %33 : vector<8x128xbf16> to vector<1x8x128xbf16>
    tpu.vector_store %arg6[%34, %c0_23, %c0_24], %37 {strides = array<i32>} : memref<8x8x128xbf16, #tpu.memory_space<vmem>>, vector<1x8x128xbf16>,
    %c2_i32 = arith.constant 2 : i32
    %38 = arith.index_cast %c2_i32 : i32 to index
    %c0_25 = arith.constant 0 : index
    %c0_26 = arith.constant 0 : index
    %39 = vector.load %arg9[%38, %c0_25, %c0_26] : memref<8x8x128xf32, #tpu.memory_space<vmem>>, vector<1x8x128xf32>
    %40 = vector.shape_cast %39 : vector<1x8x128xf32> to vector<8x128xf32>
    %41 = arith.truncf %32 : vector<8x128xf32> to vector<8x128xbf16>
    %cst_27 = arith.constant dense<0.000000e+00> : vector<8x128xf32>
    %42 = tpu.matmul %41, %12, %cst_27 {dimension_numbers = #tpu.dot_dimension_numbers<[1], [0], [0], [1], [0, 0, 1, 1], [], []>} : vector<8x128xbf16>, vector<128x128xbf16>, vector<8x128xf32> -> vector<8x128xf32>
    %43 = arith.addf %40, %42 : vector<8x128xf32>
    %44 = math.tanh %43 : vector<8x128xf32>
    %45 = arith.truncf %44 : vector<8x128xf32> to vector<8x128xbf16>
    %46 = arith.index_cast %c2_i32 : i32 to index
    %c0_28 = arith.constant 0 : index
    %c0_29 = arith.constant 0 : index
    %47 = vector.load %arg6[%46, %c0_28, %c0_29] : memref<8x8x128xbf16, #tpu.memory_space<vmem>>, vector<1x8x128xbf16>
    %48 = vector.shape_cast %47 : vector<1x8x128xbf16> to vector<8x128xbf16>
    %49 = vector.shape_cast %45 : vector<8x128xbf16> to vector<1x8x128xbf16>
    tpu.vector_store %arg6[%46, %c0_28, %c0_29], %49 {strides = array<i32>} : memref<8x8x128xbf16, #tpu.memory_space<vmem>>, vector<1x8x128xbf16>,
    %c3_i32 = arith.constant 3 : i32
    %50 = arith.index_cast %c3_i32 : i32 to index
    %c0_30 = arith.constant 0 : index
    %c0_31 = arith.constant 0 : index
    %51 = vector.load %arg9[%50, %c0_30, %c0_31] : memref<8x8x128xf32, #tpu.memory_space<vmem>>, vector<1x8x128xf32>
    %52 = vector.shape_cast %51 : vector<1x8x128xf32> to vector<8x128xf32>
    %53 = arith.truncf %44 : vector<8x128xf32> to vector<8x128xbf16>
    %cst_32 = arith.constant dense<0.000000e+00> : vector<8x128xf32>
    %54 = tpu.matmul %53, %12, %cst_32 {dimension_numbers = #tpu.dot_dimension_numbers<[1], [0], [0], [1], [0, 0, 1, 1], [], []>} : vector<8x128xbf16>, vector<128x128xbf16>, vector<8x128xf32> -> vector<8x128xf32>
    %55 = arith.addf %52, %54 : vector<8x128xf32>
    %56 = math.tanh %55 : vector<8x128xf32>
    %57 = arith.truncf %56 : vector<8x128xf32> to vector<8x128xbf16>
    %58 = arith.index_cast %c3_i32 : i32 to index
    %c0_33 = arith.constant 0 : index
    %c0_34 = arith.constant 0 : index
    %59 = vector.load %arg6[%58, %c0_33, %c0_34] : memref<8x8x128xbf16, #tpu.memory_space<vmem>>, vector<1x8x128xbf16>
    %60 = vector.shape_cast %59 : vector<1x8x128xbf16> to vector<8x128xbf16>
    %61 = vector.shape_cast %57 : vector<8x128xbf16> to vector<1x8x128xbf16>
    tpu.vector_store %arg6[%58, %c0_33, %c0_34], %61 {strides = array<i32>} : memref<8x8x128xbf16, #tpu.memory_space<vmem>>, vector<1x8x128xbf16>,
    %c4_i32 = arith.constant 4 : i32
    %62 = arith.index_cast %c4_i32 : i32 to index
    %c0_35 = arith.constant 0 : index
    %c0_36 = arith.constant 0 : index
    %63 = vector.load %arg9[%62, %c0_35, %c0_36] : memref<8x8x128xf32, #tpu.memory_space<vmem>>, vector<1x8x128xf32>
    %64 = vector.shape_cast %63 : vector<1x8x128xf32> to vector<8x128xf32>
    %65 = arith.truncf %56 : vector<8x128xf32> to vector<8x128xbf16>
    %cst_37 = arith.constant dense<0.000000e+00> : vector<8x128xf32>
    %66 = tpu.matmul %65, %12, %cst_37 {dimension_numbers = #tpu.dot_dimension_numbers<[1], [0], [0], [1], [0, 0, 1, 1], [], []>} : vector<8x128xbf16>, vector<128x128xbf16>, vector<8x128xf32> -> vector<8x128xf32>
    %67 = arith.addf %64, %66 : vector<8x128xf32>
    %68 = math.tanh %67 : vector<8x128xf32>
    %69 = arith.truncf %68 : vector<8x128xf32> to vector<8x128xbf16>
    %70 = arith.index_cast %c4_i32 : i32 to index
    %c0_38 = arith.constant 0 : index
    %c0_39 = arith.constant 0 : index
    %71 = vector.load %arg6[%70, %c0_38, %c0_39] : memref<8x8x128xbf16, #tpu.memory_space<vmem>>, vector<1x8x128xbf16>
    %72 = vector.shape_cast %71 : vector<1x8x128xbf16> to vector<8x128xbf16>
    %73 = vector.shape_cast %69 : vector<8x128xbf16> to vector<1x8x128xbf16>
    tpu.vector_store %arg6[%70, %c0_38, %c0_39], %73 {strides = array<i32>} : memref<8x8x128xbf16, #tpu.memory_space<vmem>>, vector<1x8x128xbf16>,
    %c5_i32 = arith.constant 5 : i32
    %74 = arith.index_cast %c5_i32 : i32 to index
    %c0_40 = arith.constant 0 : index
    %c0_41 = arith.constant 0 : index
    %75 = vector.load %arg9[%74, %c0_40, %c0_41] : memref<8x8x128xf32, #tpu.memory_space<vmem>>, vector<1x8x128xf32>
    %76 = vector.shape_cast %75 : vector<1x8x128xf32> to vector<8x128xf32>
    %77 = arith.truncf %68 : vector<8x128xf32> to vector<8x128xbf16>
    %cst_42 = arith.constant dense<0.000000e+00> : vector<8x128xf32>
    %78 = tpu.matmul %77, %12, %cst_42 {dimension_numbers = #tpu.dot_dimension_numbers<[1], [0], [0], [1], [0, 0, 1, 1], [], []>} : vector<8x128xbf16>, vector<128x128xbf16>, vector<8x128xf32> -> vector<8x128xf32>
    %79 = arith.addf %76, %78 : vector<8x128xf32>
    %80 = math.tanh %79 : vector<8x128xf32>
    %81 = arith.truncf %80 : vector<8x128xf32> to vector<8x128xbf16>
    %82 = arith.index_cast %c5_i32 : i32 to index
    %c0_43 = arith.constant 0 : index
    %c0_44 = arith.constant 0 : index
    %83 = vector.load %arg6[%82, %c0_43, %c0_44] : memref<8x8x128xbf16, #tpu.memory_space<vmem>>, vector<1x8x128xbf16>
    %84 = vector.shape_cast %83 : vector<1x8x128xbf16> to vector<8x128xbf16>
    %85 = vector.shape_cast %81 : vector<8x128xbf16> to vector<1x8x128xbf16>
    tpu.vector_store %arg6[%82, %c0_43, %c0_44], %85 {strides = array<i32>} : memref<8x8x128xbf16, #tpu.memory_space<vmem>>, vector<1x8x128xbf16>,
    %c6_i32 = arith.constant 6 : i32
    %86 = arith.index_cast %c6_i32 : i32 to index
    %c0_45 = arith.constant 0 : index
    %c0_46 = arith.constant 0 : index
    %87 = vector.load %arg9[%86, %c0_45, %c0_46] : memref<8x8x128xf32, #tpu.memory_space<vmem>>, vector<1x8x128xf32>
    %88 = vector.shape_cast %87 : vector<1x8x128xf32> to vector<8x128xf32>
    %89 = arith.truncf %80 : vector<8x128xf32> to vector<8x128xbf16>
    %cst_47 = arith.constant dense<0.000000e+00> : vector<8x128xf32>
    %90 = tpu.matmul %89, %12, %cst_47 {dimension_numbers = #tpu.dot_dimension_numbers<[1], [0], [0], [1], [0, 0, 1, 1], [], []>} : vector<8x128xbf16>, vector<128x128xbf16>, vector<8x128xf32> -> vector<8x128xf32>
    %91 = arith.addf %88, %90 : vector<8x128xf32>
    %92 = math.tanh %91 : vector<8x128xf32>
    %93 = arith.truncf %92 : vector<8x128xf32> to vector<8x128xbf16>
    %94 = arith.index_cast %c6_i32 : i32 to index
    %c0_48 = arith.constant 0 : index
    %c0_49 = arith.constant 0 : index
    %95 = vector.load %arg6[%94, %c0_48, %c0_49] : memref<8x8x128xbf16, #tpu.memory_space<vmem>>, vector<1x8x128xbf16>
    %96 = vector.shape_cast %95 : vector<1x8x128xbf16> to vector<8x128xbf16>
    %97 = vector.shape_cast %93 : vector<8x128xbf16> to vector<1x8x128xbf16>
    tpu.vector_store %arg6[%94, %c0_48, %c0_49], %97 {strides = array<i32>} : memref<8x8x128xbf16, #tpu.memory_space<vmem>>, vector<1x8x128xbf16>,
    %c7_i32 = arith.constant 7 : i32
    %98 = arith.index_cast %c7_i32 : i32 to index
    %c0_50 = arith.constant 0 : index
    %c0_51 = arith.constant 0 : index
    %99 = vector.load %arg9[%98, %c0_50, %c0_51] : memref<8x8x128xf32, #tpu.memory_space<vmem>>, vector<1x8x128xf32>
    %100 = vector.shape_cast %99 : vector<1x8x128xf32> to vector<8x128xf32>
    %101 = arith.truncf %92 : vector<8x128xf32> to vector<8x128xbf16>
    %cst_52 = arith.constant dense<0.000000e+00> : vector<8x128xf32>
    %102 = tpu.matmul %101, %12, %cst_52 {dimension_numbers = #tpu.dot_dimension_numbers<[1], [0], [0], [1], [0, 0, 1, 1], [], []>} : vector<8x128xbf16>, vector<128x128xbf16>, vector<8x128xf32> -> vector<8x128xf32>
    %103 = arith.addf %100, %102 : vector<8x128xf32>
    %104 = math.tanh %103 : vector<8x128xf32>
    %105 = arith.truncf %104 : vector<8x128xf32> to vector<8x128xbf16>
    %106 = arith.index_cast %c7_i32 : i32 to index
    %c0_53 = arith.constant 0 : index
    %c0_54 = arith.constant 0 : index
    %107 = vector.load %arg6[%106, %c0_53, %c0_54] : memref<8x8x128xbf16, #tpu.memory_space<vmem>>, vector<1x8x128xbf16>
    %108 = vector.shape_cast %107 : vector<1x8x128xbf16> to vector<8x128xbf16>
    %109 = vector.shape_cast %105 : vector<8x128xbf16> to vector<1x8x128xbf16>
    tpu.vector_store %arg6[%106, %c0_53, %c0_54], %109 {strides = array<i32>} : memref<8x8x128xbf16, #tpu.memory_space<vmem>>, vector<1x8x128xbf16>,
    %c8_i32 = arith.constant 8 : i32
    %c0_55 = arith.constant 0 : index
    %c0_56 = arith.constant 0 : index
    %110 = vector.load %arg8[%c0_55, %c0_56] : memref<8x128xf32, #tpu.memory_space<vmem>>, vector<8x128xf32>
    tpu.vector_store %arg8[%c0_55, %c0_56], %104 {strides = array<i32>} : memref<8x128xf32, #tpu.memory_space<vmem>>, vector<8x128xf32>,
    %c0_i32_57 = arith.constant 0 : i32
    %111 = arith.cmpi eq, %arg1, %c0_i32_57 : i32
    %112 = arith.extui %111 : i1 to i32
    %c0_i32_58 = arith.constant 0 : i32
    %113 = arith.cmpi ne, %112, %c0_i32_58 : i32
    scf.if %113 {
      %c0_59 = arith.constant 0 : index
      %c0_60 = arith.constant 0 : index
      %114 = vector.load %arg7[%c0_59, %c0_60] : memref<8x128xf32, #tpu.memory_space<vmem>>, vector<8x128xf32>
      tpu.vector_store %arg7[%c0_59, %c0_60], %104 {strides = array<i32>} : memref<8x128xf32, #tpu.memory_space<vmem>>, vector<8x128xf32>,
    } else {
    }
    return
  }
  func.func @transform_0(%arg0: i32, %arg1: i32) -> (i32, i32, i32) {
    %c0_i32 = arith.constant 0 : i32
    %c0_i32_0 = arith.constant 0 : i32
    return %arg1, %arg0, %c0_i32 : i32, i32, i32
  }
  func.func @transform_1(%arg0: i32, %arg1: i32) -> (i32, i32) {
    %c0_i32 = arith.constant 0 : i32
    %c0_i32_0 = arith.constant 0 : i32
    %c0_i32_1 = arith.constant 0 : i32
    return %c0_i32, %c0_i32_0 : i32, i32
  }
  func.func @transform_2(%arg0: i32, %arg1: i32) -> (i32, i32) {
    %c0_i32 = arith.constant 0 : i32
    %c0_i32_0 = arith.constant 0 : i32
    %c0_i32_1 = arith.constant 0 : i32
    return %c0_i32, %c0_i32_0 : i32, i32
  }
  func.func @transform_3(%arg0: i32, %arg1: i32) -> (i32, i32) {
    %c0_i32 = arith.constant 0 : i32
    %c0_i32_0 = arith.constant 0 : i32
    %c0_i32_1 = arith.constant 0 : i32
    return %c0_i32, %c0_i32_0 : i32, i32
  }
  func.func @transform_4(%arg0: i32, %arg1: i32) -> (i32, i32, i32) {
    %c0_i32 = arith.constant 0 : i32
    %c0_i32_0 = arith.constant 0 : i32
    return %arg1, %arg0, %c0_i32 : i32, i32, i32
  }
  func.func @transform_5(%arg0: i32, %arg1: i32) -> (i32, i32) {
    %c0_i32 = arith.constant 0 : i32
    %c0_i32_0 = arith.constant 0 : i32
    return %arg0, %c0_i32 : i32, i32
  }
}

</mosaic_0001>

<bundles_post_ra>
// kernel: rnn_forward.5
= control target key start
LH: loop header
LB: loop body
LE: loop exit
PB: predicated region body
PF: predicated region fallthrough
CT: control target
= control target key end

     0   :  { %s355_s1 = inlined_call_operand.vmem [shape: bf16[128,128], index: 1, kind: input, shape index: {}]   ;;  %s356_s0 = inlined_call_operand.vmem [shape: bf16[64,128], index: 0, kind: input, shape index: {}]   ;;  %s357_s2 = inlined_call_operand.vmem [shape: f32[1,128], index: 2, kind: input, shape index: {}]   ;;  %s358_s3 = inlined_call_operand.vmem [shape: f32[64,128], index: 3, kind: output, shape index: {}]  }
   0x1   :  { %v260_v0 = vld [vmem:[%s355_s1] sm:$0xff]   ;;  %v261_v1 = vld [vmem:[%s355_s1 + $0x8] sm:$0xff]   ;;  %v262_v2 = vld [vmem:[%s355_s1 + $0x10] sm:$0xff]  }
   0x2   :  { %220 = vmatprep.subr.bf16.mxu0 %v260_v0  ;;  %244 = vmatprep.subr.bf16.mxu1 %v260_v0  ;;  %v263_v3 = vld [vmem:[%s355_s1 + $0x18] sm:$0xff]   ;;  %v268_v4 = vld [vmem:[%s356_s0] sm:$0xff]   ;;  %v269_v5 = vld [vmem:[%s356_s0 + $0x10] sm:$0xff]  }
   0x3   :  { %221 = vmatpush3.bf16.msra.mxu0 %v260_v0  ;;  %252 = vmatpush3.bf16.msra.mxu1 %v260_v0  ;;  %v264_v6 = vld [vmem:[%s355_s1 + $0x20] sm:$0xff]   ;;  %v265_v7 = vld [vmem:[%s355_s1 + $0x28] sm:$0xff]   ;;  %v266_v8 = vld [vmem:[%s355_s1 + $0x30] sm:$0xff]  }
   0x4   :  { %222 = vmatprep.subr.bf16.mxu0 %v261_v1  ;;  %245 = vmatprep.subr.bf16.mxu1 %v261_v1  ;;  %v267_v9 = vld [vmem:[%s355_s1 + $0x38] sm:$0xff]   ;;  %v270_v10 = vld [vmem:[%s356_s0 + $0x8] sm:$0xff]   ;;  %v195_v12 = vld [vmem:[%s357_s2] ss:$0 sm:$0xff] }
   0x5   :  { %236 = vmatprep.mubr.bf16.mxu0 %v268_v4  ;;  %240 = vmatprep.mubr.bf16.mxu1 %v269_v5  ;;  %v271_v11 = vld [vmem:[%s356_s0 + $0x18] sm:$0xff]  }
   0x7   :  { %223 = vmatpush3.bf16.msra.mxu0 %v261_v1  ;;  %253 = vmatpush3.bf16.msra.mxu1 %v261_v1 }
   0x8   :  { %224 = vmatprep.subr.bf16.mxu0 %v262_v2  ;;  %246 = vmatprep.subr.bf16.mxu1 %v262_v2 }
   0xb   :  { %225 = vmatpush3.bf16.msra.mxu0 %v262_v2  ;;  %254 = vmatpush3.bf16.msra.mxu1 %v262_v2 }
   0xc   :  { %226 = vmatprep.subr.bf16.mxu0 %v263_v3  ;;  %247 = vmatprep.subr.bf16.mxu1 %v263_v3 }
   0xf   :  { %227 = vmatpush3.bf16.msra.mxu0 %v263_v3  ;;  %255 = vmatpush3.bf16.msra.mxu1 %v263_v3 }
  0x10   :  { %228 = vmatprep.subr.bf16.mxu0 %v264_v6  ;;  %248 = vmatprep.subr.bf16.mxu1 %v264_v6 }
  0x13   :  { %229 = vmatpush3.bf16.msra.mxu0 %v264_v6  ;;  %256 = vmatpush3.bf16.msra.mxu1 %v264_v6 }
  0x14   :  { %230 = vmatprep.subr.bf16.mxu0 %v265_v7  ;;  %249 = vmatprep.subr.bf16.mxu1 %v265_v7 }
  0x17   :  { %231 = vmatpush3.bf16.msra.mxu0 %v265_v7  ;;  %257 = vmatpush3.bf16.msra.mxu1 %v265_v7 }
  0x18   :  { %232 = vmatprep.subr.bf16.mxu0 %v266_v8  ;;  %250 = vmatprep.subr.bf16.mxu1 %v266_v8 }
  0x1b   :  { %233 = vmatpush3.bf16.msra.mxu0 %v266_v8  ;;  %258 = vmatpush3.bf16.msra.mxu1 %v266_v8 }
  0x1c   :  { %234 = vmatprep.subr.bf16.mxu0 %v267_v9  ;;  %251 = vmatprep.subr.bf16.mxu1 %v267_v9 }
  0x1f   :  { %235 = vmatpush3.bf16.msra.mxu0 %v267_v9  ;;  %259 = vmatpush3.bf16.msra.mxu1 %v267_v9 }
  0x22   :  { %237 = vmatmul.mubr.bf16.vlgmr.msra.gmra.mrb[0].mxu0 %v270_v10  ;;  %241 = vmatmul.mubr.bf16.vlgmr.msra.gmra.mrb[0].mxu1 %v271_v11 }
  0xf5   :  { %v238_v13 = vpop.f32.mrb[0].mxu0  ;;  %v242_v14 = vpop.f32.mrb[0].mxu1 }
  0xf6   :  { %v161_v15 = vadd.f32 %v238_v13, %v195_v12  ;;  %v177_v16 = vadd.f32 %v242_v14, %v195_v12  ;;  %v152_v17 = vpop.f32.mrb[1].mxu0  ;;  %v168_v18 = vpop.f32.mrb[1].mxu1 }
  0xf7   :  { %v153_v19 = vadd.f32 %v195_v12, %v152_v17  ;;  %v169_v20 = vadd.f32 %v195_v12, %v168_v18  ;;  %v239_v21 = vpop.f32.mrb[2].mxu0  ;;  %v243_v22 = vpop.f32.mrb[2].mxu1 }
  0xf8   :  { %185 = vst [vmem:[%s358_s3 + $0x10] sm:$0xff] %v161_v15  ;;  %189 = vst [vmem:[%s358_s3 + $0x30] sm:$0xff] %v177_v16  ;;  %v164_v23 = vadd.f32 %v239_v21, %v195_v12  ;;  %v180_v24 = vadd.f32 %v243_v22, %v195_v12  ;;  %v155_v25 = vpop.f32.mrb[3].mxu0  ;;  %v171_v26 = vpop.f32.mrb[3].mxu1 }
  0xf9   :  { %183 = vst [vmem:[%s358_s3] sm:$0xff] %v153_v19  ;;  %187 = vst [vmem:[%s358_s3 + $0x20] sm:$0xff] %v169_v20  ;;  %v156_v27 = vadd.f32 %v195_v12, %v155_v25  ;;  %v172_v28 = vadd.f32 %v195_v12, %v171_v26 }
  0xfa   :  { %186 = vst [vmem:[%s358_s3 + $0x18] sm:$0xff] %v164_v23  ;;  %190 = vst [vmem:[%s358_s3 + $0x38] sm:$0xff] %v180_v24 }
  0xfb   :  { %184 = vst [vmem:[%s358_s3 + $0x8] sm:$0xff] %v156_v27  ;;  %188 = vst [vmem:[%s358_s3 + $0x28] sm:$0xff] %v172_v28 }

// kernel: rnn_forward.3
= control target key start
LH: loop header
LB: loop body
LE: loop exit
PB: predicated region body
PF: predicated region fallthrough
CT: control target
= control target key end

     0   :  { %v997_v1 = vmov 0.0   ;;  %vm998_vm0 = vmmov 0   ;;  %v999_v23 = vmov 0.0|0.0   ;;  %s1320_s1 = inlined_call_operand.vmem [shape: bf16[128,128], index: 1, kind: input, shape index: {}]   ;;  %s1321_s3 = inlined_call_operand.vmem [shape: bf16[128,128], index: 3, kind: input, shape index: {}]   ;;  %s1322_s0 = inlined_call_operand.vmem [shape: f32[8,8,128], index: 0, kind: input, shape index: {}]   ;;  %s1323_s2 = inlined_call_operand.vmem [shape: f32[1,128], index: 2, kind: input, shape index: {}]   ;;  %s1324_s4 = inlined_call_operand.vmem [shape: bf16[8,8,128], index: 4, kind: output, shape index: {0}]   ;;  %s1325_s5 = inlined_call_operand.vmem [shape: f32[8,128], index: 5, kind: output, shape index: {1}]  }
   0x1   :  { %v965_v0 = vld [vmem:[%s1320_s1] sm:$0xff]   ;;  %802 = vmatprep.subr.bf16.mxu1 %v997_v1  ;;  %818 = vmatprep.mubr.msk.bf16.mxu1 %vm998_vm0, %v997_v1  ;;  %v967_v3 = vld [vmem:[%s1320_s1 + $0x8] sm:$0xff]   ;;  %v969_v5 = vld [vmem:[%s1320_s1 + $0x10] sm:$0xff]  }
   0x2   :  { %v1039_v2 = vld [vmem:[%s1321_s3] sm:$0xff]   ;;  %778 = vmatprep.subr.bf16.mxu0 %v965_v0  ;;  %v1048_v4 = vld [vmem:[%s1321_s3 + $0x8] sm:$0xff]   ;;  %v1058_v6 = vld [vmem:[%s1321_s3 + $0x10] sm:$0xff]  }
   0x3   :  { %779 = vmatpush3.bf16.msra.mxu0 %v965_v0  ;;  %803 = vmatpush3.bf16.msra.mxu1 %v1039_v2  ;;  %v971_v7 = vld [vmem:[%s1320_s1 + $0x18] sm:$0xff]   ;;  %v973_v9 = vld [vmem:[%s1320_s1 + $0x20] sm:$0xff]   ;;  %v975_v11 = vld [vmem:[%s1320_s1 + $0x28] sm:$0xff]  }
   0x4   :  { %780 = vmatprep.subr.bf16.mxu0 %v967_v3  ;;  %804 = vmatprep.subr.bf16.mxu1 %v997_v1  ;;  %v1068_v8 = vld [vmem:[%s1321_s3 + $0x18] sm:$0xff]   ;;  %v1078_v10 = vld [vmem:[%s1321_s3 + $0x20] sm:$0xff]   ;;  %v26_v13 = vld [vmem:[%s1322_s0 + $0x8] sm:$0xff] }
   0x5   :  { %v25_v12 = vld [vmem:[%s1322_s0] sm:$0xff]  ;;  %v1094_v15 = vld [vmem:[%s1321_s3 + $0x28] sm:$0xff]   ;;  %v977_v16 = vld [vmem:[%s1320_s1 + $0x30] sm:$0xff]  }
   0x6   :  { %v690_v14 = vpack.c.bf16 %v26_v13, %v25_v12  ;;  %v1104_v17 = vld [vmem:[%s1321_s3 + $0x30] sm:$0xff]   ;;  %v979_v18 = vld [vmem:[%s1320_s1 + $0x38] sm:$0xff]   ;;  %v29_v24 = vld [vmem:[%s1322_s0 + $0x20] sm:$0xff] }
   0x7   :  { %781 = vmatpush3.bf16.msra.mxu0 %v967_v3  ;;  %805 = vmatpush3.bf16.msra.mxu1 %v1048_v4  ;;  %v1114_v19 = vld [vmem:[%s1321_s3 + $0x38] sm:$0xff]   ;;  %v27_v20 = vld [vmem:[%s1322_s0 + $0x10] sm:$0xff]  ;;  %v30_v25 = vld [vmem:[%s1322_s0 + $0x28] sm:$0xff] }
   0x8   :  { %782 = vmatprep.subr.bf16.mxu0 %v969_v5  ;;  %806 = vmatprep.subr.bf16.mxu1 %v997_v1  ;;  %v28_v21 = vld [vmem:[%s1322_s0 + $0x18] sm:$0xff]  ;;  %v692_v26 = vpack.c.bf16 %v30_v25, %v29_v24  ;;  %v31_v27 = vld [vmem:[%s1322_s0 + $0x30] sm:$0xff]  ;;  %v1177_v30 = vld [vmem:[%s1323_s2] ss:$0 sm:$0xff] }
   0x9   :  { %794 = vmatprep.mubr.bf16.mxu0 %v690_v14  ;;  %v691_v22 = vpack.c.bf16 %v28_v21, %v27_v20  ;;  %v32_v28 = vld [vmem:[%s1322_s0 + $0x38] sm:$0xff] }
   0xa   :  { %v693_v29 = vpack.c.bf16 %v32_v28, %v31_v27 }
   0xb   :  { %783 = vmatpush3.bf16.msra.mxu0 %v969_v5  ;;  %807 = vmatpush3.bf16.msra.mxu1 %v1058_v6 }
   0xc   :  { %784 = vmatprep.subr.bf16.mxu0 %v971_v7  ;;  %808 = vmatprep.subr.bf16.mxu1 %v997_v1 }
   0xf   :  { %785 = vmatpush3.bf16.msra.mxu0 %v971_v7  ;;  %809 = vmatpush3.bf16.msra.mxu1 %v1068_v8 }
  0x10   :  { %786 = vmatprep.subr.bf16.mxu0 %v973_v9  ;;  %810 = vmatprep.subr.bf16.mxu1 %v997_v1 }
  0x13   :  { %787 = vmatpush3.bf16.msra.mxu0 %v973_v9  ;;  %811 = vmatpush3.bf16.msra.mxu1 %v1078_v10 }
  0x14   :  { %788 = vmatprep.subr.bf16.mxu0 %v975_v11  ;;  %812 = vmatprep.subr.bf16.mxu1 %v997_v1 }
  0x17   :  { %789 = vmatpush3.bf16.msra.mxu0 %v975_v11  ;;  %813 = vmatpush3.bf16.msra.mxu1 %v1094_v15 }
  0x18   :  { %790 = vmatprep.subr.bf16.mxu0 %v977_v16  ;;  %814 = vmatprep.subr.bf16.mxu1 %v997_v1 }
  0x1b   :  { %791 = vmatpush3.bf16.msra.mxu0 %v977_v16  ;;  %815 = vmatpush3.bf16.msra.mxu1 %v1104_v17 }
  0x1c   :  { %792 = vmatprep.subr.bf16.mxu0 %v979_v18  ;;  %816 = vmatprep.subr.bf16.mxu1 %v997_v1 }
  0x1f   :  { %793 = vmatpush3.bf16.msra.mxu0 %v979_v18  ;;  %817 = vmatpush3.bf16.msra.mxu1 %v1114_v19 }
  0x20   :  { %822 = vmatprep.subr.bf16.mxu0 %v997_v1  ;;  %842 = vmatprep.subr.bf16.mxu1 %v997_v1 }
  0x22   :  { %795 = vmatmul.mubr.bf16.vlgmr.msra.gmra.mrb[0].mxu0 %v691_v22  ;;  %819 = vmatmul.mubr.bf16.vlgmr.msra.gmra.mrb[0].mxu1 %v999_v23 }
  0x23   :  { %823 = vmatpush3.bf16.msra.mxu0 %v1039_v2  ;;  %843 = vmatpush3.bf16.msra.mxu1 %v1039_v2 }
  0x24   :  { %824 = vmatprep.subr.bf16.mxu0 %v997_v1  ;;  %844 = vmatprep.subr.bf16.mxu1 %v997_v1 }
  0x25   :  { %858 = vmatprep.mubr.msk.bf16.mxu1 %vm998_vm0, %v997_v1  ;;  %798 = vmatprep.mubr.bf16.mxu0 %v692_v26 }
  0x27   :  { %825 = vmatpush3.bf16.msra.mxu0 %v1048_v4  ;;  %845 = vmatpush3.bf16.msra.mxu1 %v1048_v4 }
  0x28   :  { %826 = vmatprep.subr.bf16.mxu0 %v997_v1  ;;  %846 = vmatprep.subr.bf16.mxu1 %v997_v1 }
  0x2a   :  { %799 = vmatmul.mubr.bf16.gmra.mrb[4].mxu0 %v693_v29 }
  0x2b   :  { %827 = vmatpush3.bf16.msra.mxu0 %v1058_v6  ;;  %847 = vmatpush3.bf16.msra.mxu1 %v1058_v6 }
  0x2c   :  { %828 = vmatprep.subr.bf16.mxu0 %v997_v1  ;;  %848 = vmatprep.subr.bf16.mxu1 %v997_v1 }
  0x2d   :  { %838 = vmatprep.mubr.msk.bf16.mxu0 %vm998_vm0, %v997_v1 }
  0x2f   :  { %829 = vmatpush3.bf16.msra.mxu0 %v1068_v8  ;;  %849 = vmatpush3.bf16.msra.mxu1 %v1068_v8 }
  0x30   :  { %830 = vmatprep.subr.bf16.mxu0 %v997_v1  ;;  %850 = vmatprep.subr.bf16.mxu1 %v997_v1 }
  0x33   :  { %831 = vmatpush3.bf16.msra.mxu0 %v1078_v10  ;;  %851 = vmatpush3.bf16.msra.mxu1 %v1078_v10 }
  0x34   :  { %832 = vmatprep.subr.bf16.mxu0 %v997_v1  ;;  %852 = vmatprep.subr.bf16.mxu1 %v997_v1 }
  0x37   :  { %833 = vmatpush3.bf16.msra.mxu0 %v1094_v15  ;;  %853 = vmatpush3.bf16.msra.mxu1 %v1094_v15 }
  0x38   :  { %834 = vmatprep.subr.bf16.mxu0 %v997_v1  ;;  %854 = vmatprep.subr.bf16.mxu1 %v997_v1 }
  0x3b   :  { %835 = vmatpush3.bf16.msra.mxu0 %v1104_v17  ;;  %855 = vmatpush3.bf16.msra.mxu1 %v1104_v17 }
  0x3c   :  { %836 = vmatprep.subr.bf16.mxu0 %v997_v1  ;;  %856 = vmatprep.subr.bf16.mxu1 %v997_v1 }
  0x3f   :  { %837 = vmatpush3.bf16.msra.mxu0 %v1114_v19  ;;  %857 = vmatpush3.bf16.msra.mxu1 %v1114_v19 }
  0x40   :  { %862 = vmatprep.subr.bf16.mxu0 %v997_v1  ;;  %882 = vmatprep.subr.bf16.mxu1 %v997_v1 }
  0xf5   :  { %v1179_v31 = vpop.f32.mrb[0].mxu0  ;;  %v310_v32 = vpop.f32.mrb[0].mxu1 }
  0xf6   :  { %v170_v33 = vpop.f32.mrb[1].mxu0  ;;  %v820_v34 = vpop.f32.mrb[1].mxu1  ;;  %v179_v55 = vadd.f32 %v1179_v31, %v1177_v30 }
  0xf7   :  { %v171_v35 = vadd.f32 %v1177_v30, %v170_v33  ;;  %v1182_v36 = vpop.f32.mrb[2].mxu0  ;;  %v313_v37 = vpop.f32.mrb[2].mxu1 }
  0xf8   :  { %v173_v38 = vpop.f32.mrb[3].mxu0  ;;  %v821_v39 = vpop.f32.mrb[3].mxu1  ;;  %v182_v63 = vadd.f32 %v1182_v36, %v1177_v30 }
  0xf9   :  { %v316_v40 = vadd.f32 %v310_v32, %v171_v35  ;;  %v174_v47 = vadd.f32 %v1177_v30, %v173_v38 }
  0xfb   :  { %981 = vtanh.f32 %v316_v40 }
  0xfd   :  { %v1205_v43 = vpop.f32.mrb[4].mxu0 }
  0xfe   :  { %v1207_v44 = vpop.f32.mrb[5].mxu0 }
  0xff   :  { %v1209_v45 = vpop.f32.mrb[6].mxu0  ;;  %v187_v13 = vadd.f32 %v1177_v30, %v1207_v44 }
 0x100   :  { %v1211_v46 = vpop.f32.mrb[7].mxu0  ;;  %v198_v32 = vadd.f32 %v1209_v45, %v1177_v30 }
 0x105   :  { %v982_v41 = vpop.eup %981 }
 0x106   :  { %v318_v42 = vpack.c.bf16 %v982_v41, %v982_v41 }
 0x108   :  { %319 = vst [vmem:[%s1324_s4] sm:$0xf] %v318_v42  ;;  %839 = vmatmul.mubr.bf16.vlgmr.msra.gmra.mrb[8].mxu0 %v318_v42 }
 0x109   :  { %863 = vmatpush3.bf16.msra.mxu0 %v1039_v2  ;;  %878 = vmatprep.mubr.msk.bf16.mxu0 %vm998_vm0, %v997_v1 }
 0x10a   :  { %864 = vmatprep.subr.bf16.mxu0 %v997_v1 }
 0x10d   :  { %865 = vmatpush3.bf16.msra.mxu0 %v1048_v4 }
 0x10e   :  { %866 = vmatprep.subr.bf16.mxu0 %v997_v1 }
 0x111   :  { %867 = vmatpush3.bf16.msra.mxu0 %v1058_v6 }
 0x112   :  { %868 = vmatprep.subr.bf16.mxu0 %v997_v1 }
 0x115   :  { %869 = vmatpush3.bf16.msra.mxu0 %v1068_v8 }
 0x116   :  { %870 = vmatprep.subr.bf16.mxu0 %v997_v1 }
 0x119   :  { %871 = vmatpush3.bf16.msra.mxu0 %v1078_v10 }
 0x11a   :  { %872 = vmatprep.subr.bf16.mxu0 %v997_v1 }
 0x11d   :  { %873 = vmatpush3.bf16.msra.mxu0 %v1094_v15 }
 0x11e   :  { %874 = vmatprep.subr.bf16.mxu0 %v997_v1 }
 0x121   :  { %875 = vmatpush3.bf16.msra.mxu0 %v1104_v17 }
 0x122   :  { %876 = vmatprep.subr.bf16.mxu0 %v997_v1 }
 0x125   :  { %877 = vmatpush3.bf16.msra.mxu0 %v1114_v19 }
 0x126   :  { %902 = vmatprep.subr.bf16.mxu0 %v997_v1 }
 0x1db   :  { %v356_v48 = vpop.f32.mrb[8].mxu0 }
 0x1dc   :  { %v362_v49 = vadd.f32 %v356_v48, %v174_v47  ;;  %v840_v50 = vpop.f32.mrb[9].mxu0 }
 0x1dd   :  { %v359_v51 = vpop.f32.mrb[10].mxu0 }
 0x1de   :  { %983 = vtanh.f32 %v362_v49  ;;  %v841_v52 = vpop.f32.mrb[11].mxu0 }
 0x1e8   :  { %v984_v53 = vpop.eup %983 }
 0x1e9   :  { %v364_v54 = vpack.c.bf16 %v984_v53, %v984_v53 }
 0x1eb   :  { %683 = vst [vmem:[%s1324_s4 + $0x4] sm:$0xf] %v364_v54  ;;  %859 = vmatmul.mubr.bf16.vlgmr.msra.gmra.mrb[4].mxu1 %v364_v54 }
 0x1ec   :  { %883 = vmatpush3.bf16.msra.mxu1 %v1039_v2  ;;  %898 = vmatprep.mubr.msk.bf16.mxu1 %vm998_vm0, %v997_v1 }
 0x1ed   :  { %884 = vmatprep.subr.bf16.mxu1 %v997_v1 }
 0x1f0   :  { %885 = vmatpush3.bf16.msra.mxu1 %v1048_v4 }
 0x1f1   :  { %886 = vmatprep.subr.bf16.mxu1 %v997_v1 }
 0x1f4   :  { %887 = vmatpush3.bf16.msra.mxu1 %v1058_v6 }
 0x1f5   :  { %888 = vmatprep.subr.bf16.mxu1 %v997_v1 }
 0x1f8   :  { %889 = vmatpush3.bf16.msra.mxu1 %v1068_v8 }
 0x1f9   :  { %890 = vmatprep.subr.bf16.mxu1 %v997_v1 }
 0x1fc   :  { %891 = vmatpush3.bf16.msra.mxu1 %v1078_v10 }
 0x1fd   :  { %892 = vmatprep.subr.bf16.mxu1 %v997_v1 }
 0x200   :  { %893 = vmatpush3.bf16.msra.mxu1 %v1094_v15 }
 0x201   :  { %894 = vmatprep.subr.bf16.mxu1 %v997_v1 }
 0x204   :  { %895 = vmatpush3.bf16.msra.mxu1 %v1104_v17 }
 0x205   :  { %896 = vmatprep.subr.bf16.mxu1 %v997_v1 }
 0x208   :  { %897 = vmatpush3.bf16.msra.mxu1 %v1114_v19 }
 0x209   :  { %922 = vmatprep.subr.bf16.mxu1 %v997_v1 }
 0x2be   :  { %v403_v56 = vpop.f32.mrb[4].mxu1 }
 0x2bf   :  { %v409_v57 = vadd.f32 %v403_v56, %v179_v55  ;;  %v860_v58 = vpop.f32.mrb[5].mxu1 }
 0x2c0   :  { %v406_v59 = vpop.f32.mrb[6].mxu1 }
 0x2c1   :  { %985 = vtanh.f32 %v409_v57  ;;  %v861_v60 = vpop.f32.mrb[7].mxu1 }
 0x2cb   :  { %v986_v61 = vpop.eup %985 }
 0x2cc   :  { %v411_v62 = vpack.c.bf16 %v986_v61, %v986_v61 }
 0x2ce   :  { %684 = vst [vmem:[%s1324_s4 + $0x8] sm:$0xf] %v411_v62  ;;  %879 = vmatmul.mubr.bf16.vlgmr.msra.gmra.mrb[12].mxu0 %v411_v62 }
 0x2cf   :  { %903 = vmatpush3.bf16.msra.mxu0 %v1039_v2  ;;  %918 = vmatprep.mubr.msk.bf16.mxu0 %vm998_vm0, %v997_v1 }
 0x2d0   :  { %904 = vmatprep.subr.bf16.mxu0 %v997_v1 }
 0x2d3   :  { %905 = vmatpush3.bf16.msra.mxu0 %v1048_v4 }
 0x2d4   :  { %906 = vmatprep.subr.bf16.mxu0 %v997_v1 }
 0x2d7   :  { %907 = vmatpush3.bf16.msra.mxu0 %v1058_v6 }
 0x2d8   :  { %908 = vmatprep.subr.bf16.mxu0 %v997_v1 }
 0x2db   :  { %909 = vmatpush3.bf16.msra.mxu0 %v1068_v8 }
 0x2dc   :  { %910 = vmatprep.subr.bf16.mxu0 %v997_v1 }
 0x2df   :  { %911 = vmatpush3.bf16.msra.mxu0 %v1078_v10 }
 0x2e0   :  { %912 = vmatprep.subr.bf16.mxu0 %v997_v1 }
 0x2e3   :  { %913 = vmatpush3.bf16.msra.mxu0 %v1094_v15 }
 0x2e4   :  { %914 = vmatprep.subr.bf16.mxu0 %v997_v1 }
 0x2e7   :  { %915 = vmatpush3.bf16.msra.mxu0 %v1104_v17 }
 0x2e8   :  { %916 = vmatprep.subr.bf16.mxu0 %v997_v1 }
 0x2eb   :  { %917 = vmatpush3.bf16.msra.mxu0 %v1114_v19 }
 0x2ec   :  { %942 = vmatprep.subr.bf16.mxu0 %v997_v1 }
 0x3a1   :  { %v450_v0 = vpop.f32.mrb[12].mxu0 }
 0x3a2   :  { %v456_v3 = vadd.f32 %v450_v0, %v182_v63  ;;  %v880_v5 = vpop.f32.mrb[13].mxu0 }
 0x3a3   :  { %v453_v7 = vpop.f32.mrb[14].mxu0 }
 0x3a4   :  { %987 = vtanh.f32 %v456_v3  ;;  %v881_v9 = vpop.f32.mrb[15].mxu0 }
 0x3ae   :  { %v988_v11 = vpop.eup %987 }
 0x3af   :  { %v458_v12 = vpack.c.bf16 %v988_v11, %v988_v11 }
 0x3b1   :  { %685 = vst [vmem:[%s1324_s4 + $0xc] sm:$0xf] %v458_v12  ;;  %899 = vmatmul.mubr.bf16.vlgmr.msra.gmra.mrb[8].mxu1 %v458_v12 }
 0x3b2   :  { %923 = vmatpush3.bf16.msra.mxu1 %v1039_v2  ;;  %938 = vmatprep.mubr.msk.bf16.mxu1 %vm998_vm0, %v997_v1 }
 0x3b3   :  { %924 = vmatprep.subr.bf16.mxu1 %v997_v1 }
 0x3b6   :  { %925 = vmatpush3.bf16.msra.mxu1 %v1048_v4 }
 0x3b7   :  { %926 = vmatprep.subr.bf16.mxu1 %v997_v1 }
 0x3ba   :  { %927 = vmatpush3.bf16.msra.mxu1 %v1058_v6 }
 0x3bb   :  { %928 = vmatprep.subr.bf16.mxu1 %v997_v1 }
 0x3be   :  { %929 = vmatpush3.bf16.msra.mxu1 %v1068_v8 }
 0x3bf   :  { %930 = vmatprep.subr.bf16.mxu1 %v997_v1 }
 0x3c2   :  { %931 = vmatpush3.bf16.msra.mxu1 %v1078_v10 }
 0x3c3   :  { %932 = vmatprep.subr.bf16.mxu1 %v997_v1 }
 0x3c6   :  { %933 = vmatpush3.bf16.msra.mxu1 %v1094_v15 }
 0x3c7   :  { %934 = vmatprep.subr.bf16.mxu1 %v997_v1 }
 0x3ca   :  { %935 = vmatpush3.bf16.msra.mxu1 %v1104_v17 }
 0x3cb   :  { %936 = vmatprep.subr.bf16.mxu1 %v997_v1 }
 0x3ce   :  { %937 = vmatpush3.bf16.msra.mxu1 %v1114_v19 }
 0x484   :  { %v497_v14 = vpop.f32.mrb[8].mxu1 }
 0x485   :  { %v503_v16 = vadd.f32 %v497_v14, %v187_v13  ;;  %v900_v18 = vpop.f32.mrb[9].mxu1 }
 0x486   :  { %v500_v20 = vpop.f32.mrb[10].mxu1 }
 0x487   :  { %989 = vtanh.f32 %v503_v16  ;;  %v901_v21 = vpop.f32.mrb[11].mxu1 }
 0x491   :  { %v990_v22 = vpop.eup %989 }
 0x492   :  { %v505_v23 = vpack.c.bf16 %v990_v22, %v990_v22 }
 0x494   :  { %686 = vst [vmem:[%s1324_s4 + $0x10] sm:$0xf] %v505_v23  ;;  %919 = vmatmul.mubr.bf16.vlgmr.msra.gmra.mrb[16].mxu0 %v505_v23 }
 0x495   :  { %943 = vmatpush3.bf16.msra.mxu0 %v1039_v2  ;;  %958 = vmatprep.mubr.msk.bf16.mxu0 %vm998_vm0, %v997_v1  ;;  %v190_v2 = vadd.f32 %v1177_v30, %v1211_v46 }
 0x496   :  { %944 = vmatprep.subr.bf16.mxu0 %v997_v1 }
 0x499   :  { %945 = vmatpush3.bf16.msra.mxu0 %v1048_v4 }
 0x49a   :  { %946 = vmatprep.subr.bf16.mxu0 %v997_v1 }
 0x49d   :  { %947 = vmatpush3.bf16.msra.mxu0 %v1058_v6 }
 0x49e   :  { %948 = vmatprep.subr.bf16.mxu0 %v997_v1 }
 0x4a1   :  { %949 = vmatpush3.bf16.msra.mxu0 %v1068_v8 }
 0x4a2   :  { %950 = vmatprep.subr.bf16.mxu0 %v997_v1 }
 0x4a5   :  { %951 = vmatpush3.bf16.msra.mxu0 %v1078_v10 }
 0x4a6   :  { %952 = vmatprep.subr.bf16.mxu0 %v997_v1 }
 0x4a9   :  { %953 = vmatpush3.bf16.msra.mxu0 %v1094_v15 }
 0x4aa   :  { %954 = vmatprep.subr.bf16.mxu0 %v997_v1 }
 0x4ad   :  { %955 = vmatpush3.bf16.msra.mxu0 %v1104_v17 }
 0x4ae   :  { %956 = vmatprep.subr.bf16.mxu0 %v997_v1  ;;  %v195_v1 = vadd.f32 %v1205_v43, %v1177_v30 }
 0x4b1   :  { %957 = vmatpush3.bf16.msra.mxu0 %v1114_v19 }
 0x567   :  { %v544_v4 = vpop.f32.mrb[16].mxu0 }
 0x568   :  { %v550_v6 = vadd.f32 %v544_v4, %v190_v2  ;;  %v920_v8 = vpop.f32.mrb[17].mxu0 }
 0x569   :  { %v547_v24 = vpop.f32.mrb[18].mxu0 }
 0x56a   :  { %991 = vtanh.f32 %v550_v6  ;;  %v921_v10 = vpop.f32.mrb[19].mxu0 }
 0x574   :  { %v992_v25 = vpop.eup %991 }
 0x575   :  { %v552_v26 = vpack.c.bf16 %v992_v25, %v992_v25 }
 0x577   :  { %687 = vst [vmem:[%s1324_s4 + $0x14] sm:$0xf] %v552_v26  ;;  %939 = vmatmul.mubr.bf16.vlgmr.msra.gmra.mrb[12].mxu1 %v552_v26 }
 0x64a   :  { %v591_v15 = vpop.f32.mrb[12].mxu1 }
 0x64b   :  { %v597_v17 = vadd.f32 %v591_v15, %v195_v1  ;;  %v940_v19 = vpop.f32.mrb[13].mxu1 }
 0x64c   :  { %v594_v27 = vpop.f32.mrb[14].mxu1 }
 0x64d   :  { %993 = vtanh.f32 %v597_v17  ;;  %v941_v28 = vpop.f32.mrb[15].mxu1 }
 0x657   :  { %v994_v29 = vpop.eup %993 }
 0x658   :  { %v599_v31 = vpack.c.bf16 %v994_v29, %v994_v29 }
 0x65a   :  { %688 = vst [vmem:[%s1324_s4 + $0x18] sm:$0xf] %v599_v31  ;;  %959 = vmatmul.mubr.bf16.vlgmr.msra.gmra.mrb[20].mxu0 %v599_v31 }
 0x72d   :  { %v638_v33 = vpop.f32.mrb[20].mxu0 }
 0x72e   :  { %v644_v34 = vadd.f32 %v638_v33, %v198_v32  ;;  %v960_v35 = vpop.f32.mrb[21].mxu0 }
 0x72f   :  { %v641_v36 = vpop.f32.mrb[22].mxu0 }
 0x730   :  { %995 = vtanh.f32 %v644_v34  ;;  %v961_v37 = vpop.f32.mrb[23].mxu0 }
 0x73a   :  { %v996_v38 = vpop.eup %995 }
 0x73b   :  { %v646_v39 = vpack.c.bf16 %v996_v38, %v996_v38  ;;  %653 = vst [vmem:[%s1325_s5] sm:$0xff] %v996_v38 }
 0x73d   :  { %689 = vst [vmem:[%s1324_s4 + $0x1c] sm:$0xf] %v646_v39 }

// kernel: rnn_forward.4
= control target key start
LH: loop header
LB: loop body
LE: loop exit
PB: predicated region body
PF: predicated region fallthrough
CT: control target
= control target key end

     0   :  { %v989_v1 = vmov 0.0   ;;  %vm990_vm0 = vmmov 0   ;;  %v991_v19 = vmov 0.0|0.0   ;;  %s1300_s1 = inlined_call_operand.vmem [shape: bf16[128,128], index: 1, kind: input, shape index: {}]   ;;  %s1301_s3 = inlined_call_operand.vmem [shape: bf16[128,128], index: 3, kind: input, shape index: {}]   ;;  %s1302_s0 = inlined_call_operand.vmem [shape: bf16[8,8,128], index: 0, kind: input, shape index: {}]   ;;  %s1303_s2 = inlined_call_operand.vmem [shape: f32[1,128], index: 2, kind: input, shape index: {}]   ;;  %s1304_s4 = inlined_call_operand.vmem [shape: bf16[8,8,128], index: 4, kind: output, shape index: {0}]   ;;  %s1305_s5 = inlined_call_operand.vmem [shape: f32[8,128], index: 5, kind: output, shape index: {1}]  }
   0x1   :  { %v953_v0 = vld [vmem:[%s1300_s1] sm:$0xff]   ;;  %790 = vmatprep.subr.bf16.mxu1 %v989_v1  ;;  %806 = vmatprep.mubr.msk.bf16.mxu1 %vm990_vm0, %v989_v1  ;;  %v955_v3 = vld [vmem:[%s1300_s1 + $0x8] sm:$0xff]   ;;  %v957_v5 = vld [vmem:[%s1300_s1 + $0x10] sm:$0xff]  }
   0x2   :  { %v1031_v2 = vld [vmem:[%s1301_s3] sm:$0xff]   ;;  %766 = vmatprep.subr.bf16.mxu0 %v953_v0  ;;  %v1040_v4 = vld [vmem:[%s1301_s3 + $0x8] sm:$0xff]   ;;  %v1050_v6 = vld [vmem:[%s1301_s3 + $0x10] sm:$0xff]  }
   0x3   :  { %767 = vmatpush3.bf16.msra.mxu0 %v953_v0  ;;  %791 = vmatpush3.bf16.msra.mxu1 %v1031_v2  ;;  %v959_v7 = vld [vmem:[%s1300_s1 + $0x18] sm:$0xff]   ;;  %v961_v9 = vld [vmem:[%s1300_s1 + $0x20] sm:$0xff]   ;;  %v963_v11 = vld [vmem:[%s1300_s1 + $0x28] sm:$0xff]  }
   0x4   :  { %768 = vmatprep.subr.bf16.mxu0 %v955_v3  ;;  %792 = vmatprep.subr.bf16.mxu1 %v989_v1  ;;  %v1060_v8 = vld [vmem:[%s1301_s3 + $0x18] sm:$0xff]   ;;  %v1069_v10 = vld [vmem:[%s1301_s3 + $0x20] sm:$0xff]   ;;  %v1083_v13 = vld [vmem:[%s1301_s3 + $0x28] sm:$0xff]  }
   0x5   :  { %v969_v12 = vld [vmem:[%s1302_s0] sm:$0xff]   ;;  %v965_v14 = vld [vmem:[%s1300_s1 + $0x30] sm:$0xff]   ;;  %v967_v16 = vld [vmem:[%s1300_s1 + $0x38] sm:$0xff]  }
   0x6   :  { %782 = vmatprep.mubr.bf16.mxu0 %v969_v12  ;;  %v1093_v15 = vld [vmem:[%s1301_s3 + $0x30] sm:$0xff]   ;;  %v1103_v17 = vld [vmem:[%s1301_s3 + $0x38] sm:$0xff]   ;;  %v970_v18 = vld [vmem:[%s1302_s0 + $0x8] sm:$0xff]  }
   0x7   :  { %769 = vmatpush3.bf16.msra.mxu0 %v955_v3  ;;  %793 = vmatpush3.bf16.msra.mxu1 %v1040_v4  ;;  %v971_v20 = vld [vmem:[%s1302_s0 + $0x10] sm:$0xff]   ;;  %v972_v21 = vld [vmem:[%s1302_s0 + $0x18] sm:$0xff]   ;;  %v1157_v22 = vld [vmem:[%s1303_s2] ss:$0 sm:$0xff] }
   0x8   :  { %770 = vmatprep.subr.bf16.mxu0 %v957_v5  ;;  %794 = vmatprep.subr.bf16.mxu1 %v989_v1 }
   0xb   :  { %771 = vmatpush3.bf16.msra.mxu0 %v957_v5  ;;  %795 = vmatpush3.bf16.msra.mxu1 %v1050_v6 }
   0xc   :  { %772 = vmatprep.subr.bf16.mxu0 %v959_v7  ;;  %796 = vmatprep.subr.bf16.mxu1 %v989_v1 }
   0xf   :  { %773 = vmatpush3.bf16.msra.mxu0 %v959_v7  ;;  %797 = vmatpush3.bf16.msra.mxu1 %v1060_v8 }
  0x10   :  { %774 = vmatprep.subr.bf16.mxu0 %v961_v9  ;;  %798 = vmatprep.subr.bf16.mxu1 %v989_v1 }
  0x13   :  { %775 = vmatpush3.bf16.msra.mxu0 %v961_v9  ;;  %799 = vmatpush3.bf16.msra.mxu1 %v1069_v10 }
  0x14   :  { %776 = vmatprep.subr.bf16.mxu0 %v963_v11  ;;  %800 = vmatprep.subr.bf16.mxu1 %v989_v1 }
  0x17   :  { %777 = vmatpush3.bf16.msra.mxu0 %v963_v11  ;;  %801 = vmatpush3.bf16.msra.mxu1 %v1083_v13 }
  0x18   :  { %778 = vmatprep.subr.bf16.mxu0 %v965_v14  ;;  %802 = vmatprep.subr.bf16.mxu1 %v989_v1 }
  0x1b   :  { %779 = vmatpush3.bf16.msra.mxu0 %v965_v14  ;;  %803 = vmatpush3.bf16.msra.mxu1 %v1093_v15 }
  0x1c   :  { %780 = vmatprep.subr.bf16.mxu0 %v967_v16  ;;  %804 = vmatprep.subr.bf16.mxu1 %v989_v1 }
  0x1f   :  { %781 = vmatpush3.bf16.msra.mxu0 %v967_v16  ;;  %805 = vmatpush3.bf16.msra.mxu1 %v1103_v17 }
  0x20   :  { %810 = vmatprep.subr.bf16.mxu0 %v989_v1  ;;  %830 = vmatprep.subr.bf16.mxu1 %v989_v1 }
  0x22   :  { %783 = vmatmul.mubr.bf16.vlgmr.msra.gmra.mrb[0].mxu0 %v970_v18  ;;  %807 = vmatmul.mubr.bf16.vlgmr.msra.gmra.mrb[0].mxu1 %v991_v19 }
  0x23   :  { %811 = vmatpush3.bf16.msra.mxu0 %v1031_v2  ;;  %831 = vmatpush3.bf16.msra.mxu1 %v1031_v2 }
  0x24   :  { %812 = vmatprep.subr.bf16.mxu0 %v989_v1  ;;  %832 = vmatprep.subr.bf16.mxu1 %v989_v1 }
  0x25   :  { %846 = vmatprep.mubr.msk.bf16.mxu1 %vm990_vm0, %v989_v1  ;;  %786 = vmatprep.mubr.bf16.mxu0 %v971_v20 }
  0x27   :  { %813 = vmatpush3.bf16.msra.mxu0 %v1040_v4  ;;  %833 = vmatpush3.bf16.msra.mxu1 %v1040_v4 }
  0x28   :  { %814 = vmatprep.subr.bf16.mxu0 %v989_v1  ;;  %834 = vmatprep.subr.bf16.mxu1 %v989_v1 }
  0x2a   :  { %787 = vmatmul.mubr.bf16.gmra.mrb[4].mxu0 %v972_v21 }
  0x2b   :  { %815 = vmatpush3.bf16.msra.mxu0 %v1050_v6  ;;  %835 = vmatpush3.bf16.msra.mxu1 %v1050_v6 }
  0x2c   :  { %816 = vmatprep.subr.bf16.mxu0 %v989_v1  ;;  %836 = vmatprep.subr.bf16.mxu1 %v989_v1 }
  0x2d   :  { %826 = vmatprep.mubr.msk.bf16.mxu0 %vm990_vm0, %v989_v1 }
  0x2f   :  { %817 = vmatpush3.bf16.msra.mxu0 %v1060_v8  ;;  %837 = vmatpush3.bf16.msra.mxu1 %v1060_v8 }
  0x30   :  { %818 = vmatprep.subr.bf16.mxu0 %v989_v1  ;;  %838 = vmatprep.subr.bf16.mxu1 %v989_v1 }
  0x33   :  { %819 = vmatpush3.bf16.msra.mxu0 %v1069_v10  ;;  %839 = vmatpush3.bf16.msra.mxu1 %v1069_v10 }
  0x34   :  { %820 = vmatprep.subr.bf16.mxu0 %v989_v1  ;;  %840 = vmatprep.subr.bf16.mxu1 %v989_v1 }
  0x37   :  { %821 = vmatpush3.bf16.msra.mxu0 %v1083_v13  ;;  %841 = vmatpush3.bf16.msra.mxu1 %v1083_v13 }
  0x38   :  { %822 = vmatprep.subr.bf16.mxu0 %v989_v1  ;;  %842 = vmatprep.subr.bf16.mxu1 %v989_v1 }
  0x3b   :  { %823 = vmatpush3.bf16.msra.mxu0 %v1093_v15  ;;  %843 = vmatpush3.bf16.msra.mxu1 %v1093_v15 }
  0x3c   :  { %824 = vmatprep.subr.bf16.mxu0 %v989_v1  ;;  %844 = vmatprep.subr.bf16.mxu1 %v989_v1 }
  0x3f   :  { %825 = vmatpush3.bf16.msra.mxu0 %v1103_v17  ;;  %845 = vmatpush3.bf16.msra.mxu1 %v1103_v17 }
  0x40   :  { %850 = vmatprep.subr.bf16.mxu0 %v989_v1  ;;  %870 = vmatprep.subr.bf16.mxu1 %v989_v1 }
  0xf5   :  { %v1159_v23 = vpop.f32.mrb[0].mxu0  ;;  %v302_v24 = vpop.f32.mrb[0].mxu1 }
  0xf6   :  { %v162_v25 = vpop.f32.mrb[1].mxu0  ;;  %v808_v26 = vpop.f32.mrb[1].mxu1  ;;  %v171_v47 = vadd.f32 %v1159_v23, %v1157_v22 }
  0xf7   :  { %v163_v27 = vadd.f32 %v1157_v22, %v162_v25  ;;  %v1162_v28 = vpop.f32.mrb[2].mxu0  ;;  %v305_v29 = vpop.f32.mrb[2].mxu1 }
  0xf8   :  { %v165_v30 = vpop.f32.mrb[3].mxu0  ;;  %v809_v31 = vpop.f32.mrb[3].mxu1  ;;  %v174_v55 = vadd.f32 %v1162_v28, %v1157_v22 }
  0xf9   :  { %v308_v32 = vadd.f32 %v302_v24, %v163_v27  ;;  %v166_v39 = vadd.f32 %v1157_v22, %v165_v30 }
  0xfb   :  { %973 = vtanh.f32 %v308_v32 }
  0xfd   :  { %v1185_v35 = vpop.f32.mrb[4].mxu0 }
  0xfe   :  { %v1187_v36 = vpop.f32.mrb[5].mxu0 }
  0xff   :  { %v1189_v37 = vpop.f32.mrb[6].mxu0  ;;  %v179_v63 = vadd.f32 %v1157_v22, %v1187_v36 }
 0x100   :  { %v1191_v38 = vpop.f32.mrb[7].mxu0  ;;  %v190_v24 = vadd.f32 %v1189_v37, %v1157_v22 }
 0x105   :  { %v974_v33 = vpop.eup %973 }
 0x106   :  { %v310_v34 = vpack.c.bf16 %v974_v33, %v974_v33 }
 0x108   :  { %311 = vst [vmem:[%s1304_s4] sm:$0xf] %v310_v34  ;;  %827 = vmatmul.mubr.bf16.vlgmr.msra.gmra.mrb[8].mxu0 %v310_v34 }
 0x109   :  { %851 = vmatpush3.bf16.msra.mxu0 %v1031_v2  ;;  %866 = vmatprep.mubr.msk.bf16.mxu0 %vm990_vm0, %v989_v1 }
 0x10a   :  { %852 = vmatprep.subr.bf16.mxu0 %v989_v1 }
 0x10d   :  { %853 = vmatpush3.bf16.msra.mxu0 %v1040_v4 }
 0x10e   :  { %854 = vmatprep.subr.bf16.mxu0 %v989_v1 }
 0x111   :  { %855 = vmatpush3.bf16.msra.mxu0 %v1050_v6 }
 0x112   :  { %856 = vmatprep.subr.bf16.mxu0 %v989_v1 }
 0x115   :  { %857 = vmatpush3.bf16.msra.mxu0 %v1060_v8 }
 0x116   :  { %858 = vmatprep.subr.bf16.mxu0 %v989_v1 }
 0x119   :  { %859 = vmatpush3.bf16.msra.mxu0 %v1069_v10 }
 0x11a   :  { %860 = vmatprep.subr.bf16.mxu0 %v989_v1 }
 0x11d   :  { %861 = vmatpush3.bf16.msra.mxu0 %v1083_v13 }
 0x11e   :  { %862 = vmatprep.subr.bf16.mxu0 %v989_v1 }
 0x121   :  { %863 = vmatpush3.bf16.msra.mxu0 %v1093_v15 }
 0x122   :  { %864 = vmatprep.subr.bf16.mxu0 %v989_v1 }
 0x125   :  { %865 = vmatpush3.bf16.msra.mxu0 %v1103_v17 }
 0x126   :  { %890 = vmatprep.subr.bf16.mxu0 %v989_v1 }
 0x1db   :  { %v348_v40 = vpop.f32.mrb[8].mxu0 }
 0x1dc   :  { %v354_v41 = vadd.f32 %v348_v40, %v166_v39  ;;  %v828_v42 = vpop.f32.mrb[9].mxu0 }
 0x1dd   :  { %v351_v43 = vpop.f32.mrb[10].mxu0 }
 0x1de   :  { %975 = vtanh.f32 %v354_v41  ;;  %v829_v44 = vpop.f32.mrb[11].mxu0 }
 0x1e8   :  { %v976_v45 = vpop.eup %975 }
 0x1e9   :  { %v356_v46 = vpack.c.bf16 %v976_v45, %v976_v45 }
 0x1eb   :  { %675 = vst [vmem:[%s1304_s4 + $0x4] sm:$0xf] %v356_v46  ;;  %847 = vmatmul.mubr.bf16.vlgmr.msra.gmra.mrb[4].mxu1 %v356_v46 }
 0x1ec   :  { %871 = vmatpush3.bf16.msra.mxu1 %v1031_v2  ;;  %886 = vmatprep.mubr.msk.bf16.mxu1 %vm990_vm0, %v989_v1 }
 0x1ed   :  { %872 = vmatprep.subr.bf16.mxu1 %v989_v1 }
 0x1f0   :  { %873 = vmatpush3.bf16.msra.mxu1 %v1040_v4 }
 0x1f1   :  { %874 = vmatprep.subr.bf16.mxu1 %v989_v1 }
 0x1f4   :  { %875 = vmatpush3.bf16.msra.mxu1 %v1050_v6 }
 0x1f5   :  { %876 = vmatprep.subr.bf16.mxu1 %v989_v1 }
 0x1f8   :  { %877 = vmatpush3.bf16.msra.mxu1 %v1060_v8 }
 0x1f9   :  { %878 = vmatprep.subr.bf16.mxu1 %v989_v1 }
 0x1fc   :  { %879 = vmatpush3.bf16.msra.mxu1 %v1069_v10 }
 0x1fd   :  { %880 = vmatprep.subr.bf16.mxu1 %v989_v1 }
 0x200   :  { %881 = vmatpush3.bf16.msra.mxu1 %v1083_v13 }
 0x201   :  { %882 = vmatprep.subr.bf16.mxu1 %v989_v1 }
 0x204   :  { %883 = vmatpush3.bf16.msra.mxu1 %v1093_v15 }
 0x205   :  { %884 = vmatprep.subr.bf16.mxu1 %v989_v1 }
 0x208   :  { %885 = vmatpush3.bf16.msra.mxu1 %v1103_v17 }
 0x209   :  { %910 = vmatprep.subr.bf16.mxu1 %v989_v1 }
 0x2be   :  { %v395_v48 = vpop.f32.mrb[4].mxu1 }
 0x2bf   :  { %v401_v49 = vadd.f32 %v395_v48, %v171_v47  ;;  %v848_v50 = vpop.f32.mrb[5].mxu1 }
 0x2c0   :  { %v398_v51 = vpop.f32.mrb[6].mxu1 }
 0x2c1   :  { %977 = vtanh.f32 %v401_v49  ;;  %v849_v52 = vpop.f32.mrb[7].mxu1 }
 0x2cb   :  { %v978_v53 = vpop.eup %977 }
 0x2cc   :  { %v403_v54 = vpack.c.bf16 %v978_v53, %v978_v53 }
 0x2ce   :  { %676 = vst [vmem:[%s1304_s4 + $0x8] sm:$0xf] %v403_v54  ;;  %867 = vmatmul.mubr.bf16.vlgmr.msra.gmra.mrb[12].mxu0 %v403_v54 }
 0x2cf   :  { %891 = vmatpush3.bf16.msra.mxu0 %v1031_v2  ;;  %906 = vmatprep.mubr.msk.bf16.mxu0 %vm990_vm0, %v989_v1 }
 0x2d0   :  { %892 = vmatprep.subr.bf16.mxu0 %v989_v1 }
 0x2d3   :  { %893 = vmatpush3.bf16.msra.mxu0 %v1040_v4 }
 0x2d4   :  { %894 = vmatprep.subr.bf16.mxu0 %v989_v1 }
 0x2d7   :  { %895 = vmatpush3.bf16.msra.mxu0 %v1050_v6 }
 0x2d8   :  { %896 = vmatprep.subr.bf16.mxu0 %v989_v1 }
 0x2db   :  { %897 = vmatpush3.bf16.msra.mxu0 %v1060_v8 }
 0x2dc   :  { %898 = vmatprep.subr.bf16.mxu0 %v989_v1 }
 0x2df   :  { %899 = vmatpush3.bf16.msra.mxu0 %v1069_v10 }
 0x2e0   :  { %900 = vmatprep.subr.bf16.mxu0 %v989_v1 }
 0x2e3   :  { %901 = vmatpush3.bf16.msra.mxu0 %v1083_v13 }
 0x2e4   :  { %902 = vmatprep.subr.bf16.mxu0 %v989_v1 }
 0x2e7   :  { %903 = vmatpush3.bf16.msra.mxu0 %v1093_v15 }
 0x2e8   :  { %904 = vmatprep.subr.bf16.mxu0 %v989_v1 }
 0x2eb   :  { %905 = vmatpush3.bf16.msra.mxu0 %v1103_v17 }
 0x2ec   :  { %930 = vmatprep.subr.bf16.mxu0 %v989_v1 }
 0x3a1   :  { %v442_v56 = vpop.f32.mrb[12].mxu0 }
 0x3a2   :  { %v448_v57 = vadd.f32 %v442_v56, %v174_v55  ;;  %v868_v58 = vpop.f32.mrb[13].mxu0 }
 0x3a3   :  { %v445_v59 = vpop.f32.mrb[14].mxu0 }
 0x3a4   :  { %979 = vtanh.f32 %v448_v57  ;;  %v869_v60 = vpop.f32.mrb[15].mxu0 }
 0x3ae   :  { %v980_v61 = vpop.eup %979 }
 0x3af   :  { %v450_v62 = vpack.c.bf16 %v980_v61, %v980_v61 }
 0x3b1   :  { %677 = vst [vmem:[%s1304_s4 + $0xc] sm:$0xf] %v450_v62  ;;  %887 = vmatmul.mubr.bf16.vlgmr.msra.gmra.mrb[8].mxu1 %v450_v62 }
 0x3b2   :  { %911 = vmatpush3.bf16.msra.mxu1 %v1031_v2  ;;  %926 = vmatprep.mubr.msk.bf16.mxu1 %vm990_vm0, %v989_v1 }
 0x3b3   :  { %912 = vmatprep.subr.bf16.mxu1 %v989_v1 }
 0x3b6   :  { %913 = vmatpush3.bf16.msra.mxu1 %v1040_v4 }
 0x3b7   :  { %914 = vmatprep.subr.bf16.mxu1 %v989_v1 }
 0x3ba   :  { %915 = vmatpush3.bf16.msra.mxu1 %v1050_v6 }
 0x3bb   :  { %916 = vmatprep.subr.bf16.mxu1 %v989_v1 }
 0x3be   :  { %917 = vmatpush3.bf16.msra.mxu1 %v1060_v8 }
 0x3bf   :  { %918 = vmatprep.subr.bf16.mxu1 %v989_v1 }
 0x3c2   :  { %919 = vmatpush3.bf16.msra.mxu1 %v1069_v10 }
 0x3c3   :  { %920 = vmatprep.subr.bf16.mxu1 %v989_v1 }
 0x3c6   :  { %921 = vmatpush3.bf16.msra.mxu1 %v1083_v13 }
 0x3c7   :  { %922 = vmatprep.subr.bf16.mxu1 %v989_v1 }
 0x3ca   :  { %923 = vmatpush3.bf16.msra.mxu1 %v1093_v15 }
 0x3cb   :  { %924 = vmatprep.subr.bf16.mxu1 %v989_v1 }
 0x3ce   :  { %925 = vmatpush3.bf16.msra.mxu1 %v1103_v17 }
 0x484   :  { %v489_v0 = vpop.f32.mrb[8].mxu1 }
 0x485   :  { %v495_v3 = vadd.f32 %v489_v0, %v179_v63  ;;  %v888_v5 = vpop.f32.mrb[9].mxu1 }
 0x486   :  { %v492_v7 = vpop.f32.mrb[10].mxu1 }
 0x487   :  { %981 = vtanh.f32 %v495_v3  ;;  %v889_v9 = vpop.f32.mrb[11].mxu1 }
 0x491   :  { %v982_v11 = vpop.eup %981 }
 0x492   :  { %v497_v12 = vpack.c.bf16 %v982_v11, %v982_v11 }
 0x494   :  { %678 = vst [vmem:[%s1304_s4 + $0x10] sm:$0xf] %v497_v12  ;;  %907 = vmatmul.mubr.bf16.vlgmr.msra.gmra.mrb[16].mxu0 %v497_v12 }
 0x495   :  { %931 = vmatpush3.bf16.msra.mxu0 %v1031_v2  ;;  %946 = vmatprep.mubr.msk.bf16.mxu0 %vm990_vm0, %v989_v1  ;;  %v182_v2 = vadd.f32 %v1157_v22, %v1191_v38 }
 0x496   :  { %932 = vmatprep.subr.bf16.mxu0 %v989_v1 }
 0x499   :  { %933 = vmatpush3.bf16.msra.mxu0 %v1040_v4 }
 0x49a   :  { %934 = vmatprep.subr.bf16.mxu0 %v989_v1 }
 0x49d   :  { %935 = vmatpush3.bf16.msra.mxu0 %v1050_v6 }
 0x49e   :  { %936 = vmatprep.subr.bf16.mxu0 %v989_v1 }
 0x4a1   :  { %937 = vmatpush3.bf16.msra.mxu0 %v1060_v8 }
 0x4a2   :  { %938 = vmatprep.subr.bf16.mxu0 %v989_v1 }
 0x4a5   :  { %939 = vmatpush3.bf16.msra.mxu0 %v1069_v10 }
 0x4a6   :  { %940 = vmatprep.subr.bf16.mxu0 %v989_v1 }
 0x4a9   :  { %941 = vmatpush3.bf16.msra.mxu0 %v1083_v13 }
 0x4aa   :  { %942 = vmatprep.subr.bf16.mxu0 %v989_v1 }
 0x4ad   :  { %943 = vmatpush3.bf16.msra.mxu0 %v1093_v15 }
 0x4ae   :  { %944 = vmatprep.subr.bf16.mxu0 %v989_v1  ;;  %v187_v1 = vadd.f32 %v1185_v35, %v1157_v22 }
 0x4b1   :  { %945 = vmatpush3.bf16.msra.mxu0 %v1103_v17 }
 0x567   :  { %v536_v4 = vpop.f32.mrb[16].mxu0 }
 0x568   :  { %v542_v6 = vadd.f32 %v536_v4, %v182_v2  ;;  %v908_v8 = vpop.f32.mrb[17].mxu0 }
 0x569   :  { %v539_v14 = vpop.f32.mrb[18].mxu0 }
 0x56a   :  { %983 = vtanh.f32 %v542_v6  ;;  %v909_v10 = vpop.f32.mrb[19].mxu0 }
 0x574   :  { %v984_v16 = vpop.eup %983 }
 0x575   :  { %v544_v18 = vpack.c.bf16 %v984_v16, %v984_v16 }
 0x577   :  { %679 = vst [vmem:[%s1304_s4 + $0x14] sm:$0xf] %v544_v18  ;;  %927 = vmatmul.mubr.bf16.vlgmr.msra.gmra.mrb[12].mxu1 %v544_v18 }
 0x64a   :  { %v583_v13 = vpop.f32.mrb[12].mxu1 }
 0x64b   :  { %v589_v15 = vadd.f32 %v583_v13, %v187_v1  ;;  %v928_v17 = vpop.f32.mrb[13].mxu1 }
 0x64c   :  { %v586_v19 = vpop.f32.mrb[14].mxu1 }
 0x64d   :  { %985 = vtanh.f32 %v589_v15  ;;  %v929_v20 = vpop.f32.mrb[15].mxu1 }
 0x657   :  { %v986_v21 = vpop.eup %985 }
 0x658   :  { %v591_v23 = vpack.c.bf16 %v986_v21, %v986_v21 }
 0x65a   :  { %680 = vst [vmem:[%s1304_s4 + $0x18] sm:$0xf] %v591_v23  ;;  %947 = vmatmul.mubr.bf16.vlgmr.msra.gmra.mrb[20].mxu0 %v591_v23 }
 0x72d   :  { %v630_v25 = vpop.f32.mrb[20].mxu0 }
 0x72e   :  { %v636_v26 = vadd.f32 %v630_v25, %v190_v24  ;;  %v948_v27 = vpop.f32.mrb[21].mxu0 }
 0x72f   :  { %v633_v28 = vpop.f32.mrb[22].mxu0 }
 0x730   :  { %987 = vtanh.f32 %v636_v26  ;;  %v949_v29 = vpop.f32.mrb[23].mxu0 }
 0x73a   :  { %v988_v30 = vpop.eup %987 }
 0x73b   :  { %v638_v31 = vpack.c.bf16 %v988_v30, %v988_v30  ;;  %645 = vst [vmem:[%s1305_s5] sm:$0xff] %v988_v30 }
 0x73d   :  { %681 = vst [vmem:[%s1304_s4 + $0x1c] sm:$0xf] %v638_v31 }

</bundles_post_ra>
